<compile_context>
chip_gen: v7x
topology: tpu7x:2x2x1
jax: 0.10.0
libtpu: 0.0.40
codegen_flags: <defaults>
</compile_context>

<pallas_src>
import jax
import jax.numpy as jnp
from jax import lax
from jax.experimental import pallas as pl
from jax.experimental.pallas import tpu as pltpu
import numpy as np

EPS = 1e-5


def onet_kernel(p_ref, c_ref, wp_ref, gbw_ref, fcw_ref, fcb_ref,
                wout_ref, bout_ref, out_ref, gb_ref):
    """Whole ONet forward, channels-on-sublanes / points-on-lanes.

    p_ref   : (4, N)            canonical points (3 rows) + ones row (bias)
    c_ref   : (c_dim+1, N)      conditioning code + ones row (bias)
    wp_ref  : (H, 4)            fc_p weight with bias folded as last column
    gbw_ref : (12H, c_dim+1)    [gamma_0..gamma_5; beta_0..beta_5] conv weights,
                                bias folded as last column
    fcw_ref : (5, H, H)         fc_0..fc_4 weights (out, in)
    fcb_ref : (5, H, 1)         fc_0..fc_4 biases
    wout_ref: (H, 1), bout_ref: (1, 1)   fc_out
    out_ref : (1, N)            lane-dense output row
    gb_ref  : (12H, N)          VMEM scratch holding all gamma/beta values
    """
    H = wp_ref.shape[0]
    N = p_ref.shape[1]
    inv_n = 1.0 / N

    c = c_ref[...]                                                   # (c_dim+1, N)

    # One fused, lane-dense matmul for every gamma/beta of all 6 CBN layers.
    gb_ref[...] = jnp.dot(gbw_ref[...], c, preferred_element_type=jnp.float32)

    # fc_p (bias folded): (H, 4) @ (4, N) -> (H, N)
    net = jnp.dot(wp_ref[...], p_ref[...], preferred_element_type=jnp.float32)

    for i in range(6):
        gamma = gb_ref[i * H:(i + 1) * H, :]                         # (H, N)
        beta = gb_ref[(6 + i) * H:(7 + i) * H, :]                    # (H, N)

        # Single-pass BN statistics over the point axis (lanes), per channel.
        s1 = jnp.sum(net, axis=1, keepdims=True) * inv_n             # mean   (H, 1)
        s2 = jnp.sum(net * net, axis=1, keepdims=True) * inv_n       # E[x^2] (H, 1)
        var = jnp.maximum(s2 - s1 * s1, 0.0)
        inv_std = lax.rsqrt(var + EPS)

        # Fused normalize + conditional affine + ReLU (single pass over net).
        net = jnp.maximum(gamma * ((net - s1) * inv_std) + beta, 0.0)

        if i < 5:
            net = (jnp.dot(fcw_ref[i], net, preferred_element_type=jnp.float32)
                   + fcb_ref[i])

    # fc_out as VPU multiply + sublane reduce -> lane-dense (1, N) store.
    out_ref[...] = (jnp.sum(net * wout_ref[...], axis=0, keepdims=True)
                    + bout_ref[...])


def onet_forward(can_points, local_point_feature, cycle_distance, params):
    """can_points: (B, T, 3); local_point_feature: (B, T, F); cycle_distance: (B, T, 1)."""
    B, T, _ = can_points.shape
    N = B * T
    assert N % 128 == 0, "point axis must be a multiple of 128 for lane-dense layout"

    cond = jnp.concatenate([local_point_feature, cycle_distance], axis=-1)
    c_dim = cond.shape[-1]
    H = params["wp"].shape[0]
    f32 = jnp.float32

    # Transpose to channels-on-sublanes / points-on-lanes; append a ones row so
    # the fc_p / gamma / beta biases fold into their matmuls.
    p_t = can_points.reshape(N, 3).T.astype(f32)                      # (3, N)
    c_t = cond.reshape(N, c_dim).T.astype(f32)                        # (c_dim, N)
    ones = jnp.ones((1, N), f32)
    p_aug = jnp.concatenate([p_t, ones], axis=0)                      # (4, N)
    c_aug = jnp.concatenate([c_t, ones], axis=0)                      # (c_dim+1, N)

    wp_aug = jnp.concatenate([params["wp"], params["bp"][:, None]], axis=1)  # (H, 4)

    # Fuse all gamma/beta conv weights (+bias column) into one block.
    gw = params["gw"].reshape(6 * H, c_dim)
    gbias = params["gb"].reshape(6 * H, 1)
    bw = params["bw"].reshape(6 * H, c_dim)
    bbias = params["bb"].reshape(6 * H, 1)
    gbw = jnp.concatenate(
        [jnp.concatenate([gw, gbias], axis=1),
         jnp.concatenate([bw, bbias], axis=1)], axis=0)               # (12H, c_dim+1)

    fcw = params["fcw"]                                               # (5, H, H)
    fcb = params["fcb"][:, :, None]                                   # (5, H, 1)
    wout = params["wout"].T                                           # (H, 1)
    bout = params["bout"].reshape(1, 1)                               # (1, 1)

    args = (p_aug, c_aug, wp_aug, gbw, fcw, fcb, wout, bout)
    vmem = pl.BlockSpec(memory_space=pltpu.MemorySpace.VMEM)

    out = pl.pallas_call(
        onet_kernel,
        out_shape=jax.ShapeDtypeStruct((1, N), f32),
        in_specs=[vmem] * len(args),
        out_specs=vmem,
        scratch_shapes=[pltpu.VMEM((12 * H, N), f32)],
        compiler_params=pltpu.CompilerParams(
            vmem_limit_bytes=64 * 1024 * 1024),
    )(*args)

    return out.reshape(B, T)   # out.squeeze(1) in the PyTorch NCL view == (B, T)


def onet_ref(can_points, local_point_feature, cycle_distance, params):
    """Pure-JAX reference (same math, no Pallas) for correctness checking."""
    B, T, _ = can_points.shape
    N = B * T
    cond = jnp.concatenate([local_point_feature, cycle_distance], axis=-1)
    p = can_points.reshape(N, 3)
    c = cond.reshape(N, cond.shape[-1])

    net = p @ params["wp"].T + params["bp"]
    for i in range(6):
        gamma = c @ params["gw"][i].T + params["gb"][i]
        beta = c @ params["bw"][i].T + params["bb"][i]
        mean = jnp.mean(net, axis=0, keepdims=True)
        var = jnp.mean(jnp.square(net - mean), axis=0, keepdims=True)
        xn = (net - mean) / jnp.sqrt(var + EPS)
        net = jnp.maximum(gamma * xn + beta, 0.0)
        if i < 5:
            net = net @ params["fcw"][i].T + params["fcb"][i]
    out = net @ params["wout"].T + params["bout"]
    return out.reshape(B, T)


def init_params(key, point_feature_len, hidden_size):
    """PyTorch-natural layout: Conv1d(k=1) weights stored as (out, in)."""
    c_dim = point_feature_len + 1
    H = hidden_size
    ks = jax.random.split(key, 10)
    f32 = jnp.float32
    s = 0.1
    return {
        "wp":   s * jax.random.normal(ks[0], (H, 3), f32),
        "bp":   s * jax.random.normal(ks[1], (H,), f32),
        "gw":   s * jax.random.normal(ks[2], (6, H, c_dim), f32),
        "gb":   1.0 + s * jax.random.normal(ks[3], (6, H), f32),
        "bw":   s * jax.random.normal(ks[4], (6, H, c_dim), f32),
        "bb":   s * jax.random.normal(ks[5], (6, H), f32),
        "fcw":  s * jax.random.normal(ks[6], (5, H, H), f32),
        "fcb":  s * jax.random.normal(ks[7], (5, H), f32),
        "wout": s * jax.random.normal(ks[8], (1, H), f32),
        "bout": s * jax.random.normal(ks[9], (1,), f32),
    }


if __name__ == "__main__":
    # small, forward-consistent shapes
    B, T = 2, 128                 # batch, points per batch (N = 256, lane-dense)
    point_feature_len = 8         # -> c_dim = 9
    hidden_size = 32
    num_joints = 4                # unused in forward (kept for parity with __init__)

    key = jax.random.PRNGKey(0)
    kp, kf, kd, kw = jax.random.split(key, 4)
    can_points = jax.random.normal(kp, (B, T, 3), jnp.float32)
    local_point_feature = jax.random.normal(kf, (B, T, point_feature_len), jnp.float32)
    cycle_distance = jax.random.normal(kd, (B, T, 1), jnp.float32)

    params = init_params(kw, point_feature_len, hidden_size)

    out = onet_forward(can_points, local_point_feature, cycle_distance, params)
    out = jax.block_until_ready(out)

    ref = onet_ref(can_points, local_point_feature, cycle_distance, params)
    np.testing.assert_allclose(np.asarray(out), np.asarray(ref), rtol=1e-4, atol=1e-4)

    print("KERNEL_OK")
</pallas_src>

<mosaic_0001>
module attributes {stable_mosaic.version = 11 : i64} {
  func.func @onet_kernel(%arg0: memref<4x256xf32, #tpu.memory_space<vmem>>, %arg1: memref<10x256xf32, #tpu.memory_space<vmem>>, %arg2: memref<32x4xf32, #tpu.memory_space<vmem>>, %arg3: memref<384x10xf32, #tpu.memory_space<vmem>>, %arg4: memref<5x32x32xf32, #tpu.memory_space<vmem>>, %arg5: memref<5x32x1xf32, #tpu.memory_space<vmem>>, %arg6: memref<32x1xf32, #tpu.memory_space<vmem>>, %arg7: memref<1x1xf32, #tpu.memory_space<vmem>>, %arg8: memref<1x256xf32, #tpu.memory_space<vmem>>, %arg9: memref<384x256xf32, #tpu.memory_space<vmem>>) attributes {dimension_semantics = [], scalar_prefetch = 0 : i64, scratch_operands = 1 : i64, tpu.core_type = #tpu.core_type<tc>} {
    %c0 = arith.constant 0 : index
    %c0_0 = arith.constant 0 : index
    %0 = vector.load %arg1[%c0, %c0_0] : memref<10x256xf32, #tpu.memory_space<vmem>>, vector<10x256xf32>
    %c0_1 = arith.constant 0 : index
    %c0_2 = arith.constant 0 : index
    %1 = vector.load %arg3[%c0_1, %c0_2] : memref<384x10xf32, #tpu.memory_space<vmem>>, vector<384x10xf32>
    %cst = arith.constant dense<0.000000e+00> : vector<384x256xf32>
    %2 = tpu.matmul %1, %0, %cst {dimension_numbers = #tpu.dot_dimension_numbers<[1], [0], [0], [1], [0, 0, 1, 1], [], []>} : vector<384x10xf32>, vector<10x256xf32>, vector<384x256xf32> -> vector<384x256xf32>
    %c0_3 = arith.constant 0 : index
    %c0_4 = arith.constant 0 : index
    %3 = vector.load %arg9[%c0_3, %c0_4] : memref<384x256xf32, #tpu.memory_space<vmem>>, vector<384x256xf32>
    tpu.vector_store %arg9[%c0_3, %c0_4], %2 {strides = array<i32>} : memref<384x256xf32, #tpu.memory_space<vmem>>, vector<384x256xf32>,
    %c0_5 = arith.constant 0 : index
    %c0_6 = arith.constant 0 : index
    %4 = vector.load %arg2[%c0_5, %c0_6] : memref<32x4xf32, #tpu.memory_space<vmem>>, vector<32x4xf32>
    %c0_7 = arith.constant 0 : index
    %c0_8 = arith.constant 0 : index
    %5 = vector.load %arg0[%c0_7, %c0_8] : memref<4x256xf32, #tpu.memory_space<vmem>>, vector<4x256xf32>
    %cst_9 = arith.constant dense<0.000000e+00> : vector<32x256xf32>
    %6 = tpu.matmul %4, %5, %cst_9 {dimension_numbers = #tpu.dot_dimension_numbers<[1], [0], [0], [1], [0, 0, 1, 1], [], []>} : vector<32x4xf32>, vector<4x256xf32>, vector<32x256xf32> -> vector<32x256xf32>
    %c0_10 = arith.constant 0 : index
    %c0_11 = arith.constant 0 : index
    %7 = vector.load %arg9[%c0_10, %c0_11] : memref<384x256xf32, #tpu.memory_space<vmem>>, vector<32x256xf32>
    %c192 = arith.constant 192 : index
    %c0_12 = arith.constant 0 : index
    %8 = vector.load %arg9[%c192, %c0_12] : memref<384x256xf32, #tpu.memory_space<vmem>>, vector<32x256xf32>
    %cst_13 = arith.constant dense<0.000000e+00> : vector<32xf32>
    %9 = vector.multi_reduction <add>, %6, %cst_13 [1] : vector<32x256xf32> to vector<32xf32>
    %10 = vector.shape_cast %9 : vector<32xf32> to vector<32x1xf32>
    %cst_14 = arith.constant 3.906250e-03 : f32
    %11 = vector.broadcast %cst_14 : f32 to vector<32x1xf32>
    %12 = arith.mulf %10, %11 : vector<32x1xf32>
    %13 = arith.mulf %6, %6 : vector<32x256xf32>
    %cst_15 = arith.constant dense<0.000000e+00> : vector<32xf32>
    %14 = vector.multi_reduction <add>, %13, %cst_15 [1] : vector<32x256xf32> to vector<32xf32>
    %15 = vector.shape_cast %14 : vector<32xf32> to vector<32x1xf32>
    %cst_16 = arith.constant 3.906250e-03 : f32
    %16 = vector.broadcast %cst_16 : f32 to vector<32x1xf32>
    %17 = arith.mulf %15, %16 : vector<32x1xf32>
    %18 = arith.mulf %12, %12 : vector<32x1xf32>
    %19 = arith.subf %17, %18 : vector<32x1xf32>
    %cst_17 = arith.constant 0.000000e+00 : f32
    %20 = vector.broadcast %cst_17 : f32 to vector<32x1xf32>
    %21 = arith.maximumf %19, %20 : vector<32x1xf32>
    %cst_18 = arith.constant 9.99999974E-6 : f32
    %22 = vector.broadcast %cst_18 : f32 to vector<32x1xf32>
    %23 = arith.addf %21, %22 : vector<32x1xf32>
    %24 = math.rsqrt %23 : vector<32x1xf32>
    %25 = vector.broadcast %12 : vector<32x1xf32> to vector<32x256xf32>
    %26 = arith.subf %6, %25 : vector<32x256xf32>
    %27 = vector.broadcast %24 : vector<32x1xf32> to vector<32x256xf32>
    %28 = arith.mulf %26, %27 : vector<32x256xf32>
    %29 = arith.mulf %7, %28 : vector<32x256xf32>
    %30 = arith.addf %29, %8 : vector<32x256xf32>
    %cst_19 = arith.constant 0.000000e+00 : f32
    %31 = vector.broadcast %cst_19 : f32 to vector<32x256xf32>
    %32 = arith.maximumf %30, %31 : vector<32x256xf32>
    %c0_20 = arith.constant 0 : index
    %c0_21 = arith.constant 0 : index
    %c0_22 = arith.constant 0 : index
    %33 = vector.load %arg4[%c0_20, %c0_21, %c0_22] : memref<5x32x32xf32, #tpu.memory_space<vmem>>, vector<1x32x32xf32>
    %34 = vector.shape_cast %33 : vector<1x32x32xf32> to vector<32x32xf32>
    %cst_23 = arith.constant dense<0.000000e+00> : vector<32x256xf32>
    %35 = tpu.matmul %34, %32, %cst_23 {dimension_numbers = #tpu.dot_dimension_numbers<[1], [0], [0], [1], [0, 0, 1, 1], [], []>} : vector<32x32xf32>, vector<32x256xf32>, vector<32x256xf32> -> vector<32x256xf32>
    %c0_24 = arith.constant 0 : index
    %c0_25 = arith.constant 0 : index
    %c0_26 = arith.constant 0 : index
    %36 = vector.load %arg5[%c0_24, %c0_25, %c0_26] : memref<5x32x1xf32, #tpu.memory_space<vmem>>, vector<1x32x1xf32>
    %37 = vector.shape_cast %36 : vector<1x32x1xf32> to vector<32x1xf32>
    %38 = vector.broadcast %37 : vector<32x1xf32> to vector<32x256xf32>
    %39 = arith.addf %35, %38 : vector<32x256xf32>
    %c32 = arith.constant 32 : index
    %c0_27 = arith.constant 0 : index
    %40 = vector.load %arg9[%c32, %c0_27] : memref<384x256xf32, #tpu.memory_space<vmem>>, vector<32x256xf32>
    %c224 = arith.constant 224 : index
    %c0_28 = arith.constant 0 : index
    %41 = vector.load %arg9[%c224, %c0_28] : memref<384x256xf32, #tpu.memory_space<vmem>>, vector<32x256xf32>
    %cst_29 = arith.constant dense<0.000000e+00> : vector<32xf32>
    %42 = vector.multi_reduction <add>, %39, %cst_29 [1] : vector<32x256xf32> to vector<32xf32>
    %43 = vector.shape_cast %42 : vector<32xf32> to vector<32x1xf32>
    %cst_30 = arith.constant 3.906250e-03 : f32
    %44 = vector.broadcast %cst_30 : f32 to vector<32x1xf32>
    %45 = arith.mulf %43, %44 : vector<32x1xf32>
    %46 = arith.mulf %39, %39 : vector<32x256xf32>
    %cst_31 = arith.constant dense<0.000000e+00> : vector<32xf32>
    %47 = vector.multi_reduction <add>, %46, %cst_31 [1] : vector<32x256xf32> to vector<32xf32>
    %48 = vector.shape_cast %47 : vector<32xf32> to vector<32x1xf32>
    %cst_32 = arith.constant 3.906250e-03 : f32
    %49 = vector.broadcast %cst_32 : f32 to vector<32x1xf32>
    %50 = arith.mulf %48, %49 : vector<32x1xf32>
    %51 = arith.mulf %45, %45 : vector<32x1xf32>
    %52 = arith.subf %50, %51 : vector<32x1xf32>
    %cst_33 = arith.constant 0.000000e+00 : f32
    %53 = vector.broadcast %cst_33 : f32 to vector<32x1xf32>
    %54 = arith.maximumf %52, %53 : vector<32x1xf32>
    %cst_34 = arith.constant 9.99999974E-6 : f32
    %55 = vector.broadcast %cst_34 : f32 to vector<32x1xf32>
    %56 = arith.addf %54, %55 : vector<32x1xf32>
    %57 = math.rsqrt %56 : vector<32x1xf32>
    %58 = vector.broadcast %45 : vector<32x1xf32> to vector<32x256xf32>
    %59 = arith.subf %39, %58 : vector<32x256xf32>
    %60 = vector.broadcast %57 : vector<32x1xf32> to vector<32x256xf32>
    %61 = arith.mulf %59, %60 : vector<32x256xf32>
    %62 = arith.mulf %40, %61 : vector<32x256xf32>
    %63 = arith.addf %62, %41 : vector<32x256xf32>
    %cst_35 = arith.constant 0.000000e+00 : f32
    %64 = vector.broadcast %cst_35 : f32 to vector<32x256xf32>
    %65 = arith.maximumf %63, %64 : vector<32x256xf32>
    %c1 = arith.constant 1 : index
    %c0_36 = arith.constant 0 : index
    %c0_37 = arith.constant 0 : index
    %66 = vector.load %arg4[%c1, %c0_36, %c0_37] : memref<5x32x32xf32, #tpu.memory_space<vmem>>, vector<1x32x32xf32>
    %67 = vector.shape_cast %66 : vector<1x32x32xf32> to vector<32x32xf32>
    %cst_38 = arith.constant dense<0.000000e+00> : vector<32x256xf32>
    %68 = tpu.matmul %67, %65, %cst_38 {dimension_numbers = #tpu.dot_dimension_numbers<[1], [0], [0], [1], [0, 0, 1, 1], [], []>} : vector<32x32xf32>, vector<32x256xf32>, vector<32x256xf32> -> vector<32x256xf32>
    %c1_39 = arith.constant 1 : index
    %c0_40 = arith.constant 0 : index
    %c0_41 = arith.constant 0 : index
    %69 = vector.load %arg5[%c1_39, %c0_40, %c0_41] : memref<5x32x1xf32, #tpu.memory_space<vmem>>, vector<1x32x1xf32>
    %70 = vector.shape_cast %69 : vector<1x32x1xf32> to vector<32x1xf32>
    %71 = vector.broadcast %70 : vector<32x1xf32> to vector<32x256xf32>
    %72 = arith.addf %68, %71 : vector<32x256xf32>
    %c64 = arith.constant 64 : index
    %c0_42 = arith.constant 0 : index
    %73 = vector.load %arg9[%c64, %c0_42] : memref<384x256xf32, #tpu.memory_space<vmem>>, vector<32x256xf32>
    %c256 = arith.constant 256 : index
    %c0_43 = arith.constant 0 : index
    %74 = vector.load %arg9[%c256, %c0_43] : memref<384x256xf32, #tpu.memory_space<vmem>>, vector<32x256xf32>
    %cst_44 = arith.constant dense<0.000000e+00> : vector<32xf32>
    %75 = vector.multi_reduction <add>, %72, %cst_44 [1] : vector<32x256xf32> to vector<32xf32>
    %76 = vector.shape_cast %75 : vector<32xf32> to vector<32x1xf32>
    %cst_45 = arith.constant 3.906250e-03 : f32
    %77 = vector.broadcast %cst_45 : f32 to vector<32x1xf32>
    %78 = arith.mulf %76, %77 : vector<32x1xf32>
    %79 = arith.mulf %72, %72 : vector<32x256xf32>
    %cst_46 = arith.constant dense<0.000000e+00> : vector<32xf32>
    %80 = vector.multi_reduction <add>, %79, %cst_46 [1] : vector<32x256xf32> to vector<32xf32>
    %81 = vector.shape_cast %80 : vector<32xf32> to vector<32x1xf32>
    %cst_47 = arith.constant 3.906250e-03 : f32
    %82 = vector.broadcast %cst_47 : f32 to vector<32x1xf32>
    %83 = arith.mulf %81, %82 : vector<32x1xf32>
    %84 = arith.mulf %78, %78 : vector<32x1xf32>
    %85 = arith.subf %83, %84 : vector<32x1xf32>
    %cst_48 = arith.constant 0.000000e+00 : f32
    %86 = vector.broadcast %cst_48 : f32 to vector<32x1xf32>
    %87 = arith.maximumf %85, %86 : vector<32x1xf32>
    %cst_49 = arith.constant 9.99999974E-6 : f32
    %88 = vector.broadcast %cst_49 : f32 to vector<32x1xf32>
    %89 = arith.addf %87, %88 : vector<32x1xf32>
    %90 = math.rsqrt %89 : vector<32x1xf32>
    %91 = vector.broadcast %78 : vector<32x1xf32> to vector<32x256xf32>
    %92 = arith.subf %72, %91 : vector<32x256xf32>
    %93 = vector.broadcast %90 : vector<32x1xf32> to vector<32x256xf32>
    %94 = arith.mulf %92, %93 : vector<32x256xf32>
    %95 = arith.mulf %73, %94 : vector<32x256xf32>
    %96 = arith.addf %95, %74 : vector<32x256xf32>
    %cst_50 = arith.constant 0.000000e+00 : f32
    %97 = vector.broadcast %cst_50 : f32 to vector<32x256xf32>
    %98 = arith.maximumf %96, %97 : vector<32x256xf32>
    %c2 = arith.constant 2 : index
    %c0_51 = arith.constant 0 : index
    %c0_52 = arith.constant 0 : index
    %99 = vector.load %arg4[%c2, %c0_51, %c0_52] : memref<5x32x32xf32, #tpu.memory_space<vmem>>, vector<1x32x32xf32>
    %100 = vector.shape_cast %99 : vector<1x32x32xf32> to vector<32x32xf32>
    %cst_53 = arith.constant dense<0.000000e+00> : vector<32x256xf32>
    %101 = tpu.matmul %100, %98, %cst_53 {dimension_numbers = #tpu.dot_dimension_numbers<[1], [0], [0], [1], [0, 0, 1, 1], [], []>} : vector<32x32xf32>, vector<32x256xf32>, vector<32x256xf32> -> vector<32x256xf32>
    %c2_54 = arith.constant 2 : index
    %c0_55 = arith.constant 0 : index
    %c0_56 = arith.constant 0 : index
    %102 = vector.load %arg5[%c2_54, %c0_55, %c0_56] : memref<5x32x1xf32, #tpu.memory_space<vmem>>, vector<1x32x1xf32>
    %103 = vector.shape_cast %102 : vector<1x32x1xf32> to vector<32x1xf32>
    %104 = vector.broadcast %103 : vector<32x1xf32> to vector<32x256xf32>
    %105 = arith.addf %101, %104 : vector<32x256xf32>
    %c96 = arith.constant 96 : index
    %c0_57 = arith.constant 0 : index
    %106 = vector.load %arg9[%c96, %c0_57] : memref<384x256xf32, #tpu.memory_space<vmem>>, vector<32x256xf32>
    %c288 = arith.constant 288 : index
    %c0_58 = arith.constant 0 : index
    %107 = vector.load %arg9[%c288, %c0_58] : memref<384x256xf32, #tpu.memory_space<vmem>>, vector<32x256xf32>
    %cst_59 = arith.constant dense<0.000000e+00> : vector<32xf32>
    %108 = vector.multi_reduction <add>, %105, %cst_59 [1] : vector<32x256xf32> to vector<32xf32>
    %109 = vector.shape_cast %108 : vector<32xf32> to vector<32x1xf32>
    %cst_60 = arith.constant 3.906250e-03 : f32
    %110 = vector.broadcast %cst_60 : f32 to vector<32x1xf32>
    %111 = arith.mulf %109, %110 : vector<32x1xf32>
    %112 = arith.mulf %105, %105 : vector<32x256xf32>
    %cst_61 = arith.constant dense<0.000000e+00> : vector<32xf32>
    %113 = vector.multi_reduction <add>, %112, %cst_61 [1] : vector<32x256xf32> to vector<32xf32>
    %114 = vector.shape_cast %113 : vector<32xf32> to vector<32x1xf32>
    %cst_62 = arith.constant 3.906250e-03 : f32
    %115 = vector.broadcast %cst_62 : f32 to vector<32x1xf32>
    %116 = arith.mulf %114, %115 : vector<32x1xf32>
    %117 = arith.mulf %111, %111 : vector<32x1xf32>
    %118 = arith.subf %116, %117 : vector<32x1xf32>
    %cst_63 = arith.constant 0.000000e+00 : f32
    %119 = vector.broadcast %cst_63 : f32 to vector<32x1xf32>
    %120 = arith.maximumf %118, %119 : vector<32x1xf32>
    %cst_64 = arith.constant 9.99999974E-6 : f32
    %121 = vector.broadcast %cst_64 : f32 to vector<32x1xf32>
    %122 = arith.addf %120, %121 : vector<32x1xf32>
    %123 = math.rsqrt %122 : vector<32x1xf32>
    %124 = vector.broadcast %111 : vector<32x1xf32> to vector<32x256xf32>
    %125 = arith.subf %105, %124 : vector<32x256xf32>
    %126 = vector.broadcast %123 : vector<32x1xf32> to vector<32x256xf32>
    %127 = arith.mulf %125, %126 : vector<32x256xf32>
    %128 = arith.mulf %106, %127 : vector<32x256xf32>
    %129 = arith.addf %128, %107 : vector<32x256xf32>
    %cst_65 = arith.constant 0.000000e+00 : f32
    %130 = vector.broadcast %cst_65 : f32 to vector<32x256xf32>
    %131 = arith.maximumf %129, %130 : vector<32x256xf32>
    %c3 = arith.constant 3 : index
    %c0_66 = arith.constant 0 : index
    %c0_67 = arith.constant 0 : index
    %132 = vector.load %arg4[%c3, %c0_66, %c0_67] : memref<5x32x32xf32, #tpu.memory_space<vmem>>, vector<1x32x32xf32>
    %133 = vector.shape_cast %132 : vector<1x32x32xf32> to vector<32x32xf32>
    %cst_68 = arith.constant dense<0.000000e+00> : vector<32x256xf32>
    %134 = tpu.matmul %133, %131, %cst_68 {dimension_numbers = #tpu.dot_dimension_numbers<[1], [0], [0], [1], [0, 0, 1, 1], [], []>} : vector<32x32xf32>, vector<32x256xf32>, vector<32x256xf32> -> vector<32x256xf32>
    %c3_69 = arith.constant 3 : index
    %c0_70 = arith.constant 0 : index
    %c0_71 = arith.constant 0 : index
    %135 = vector.load %arg5[%c3_69, %c0_70, %c0_71] : memref<5x32x1xf32, #tpu.memory_space<vmem>>, vector<1x32x1xf32>
    %136 = vector.shape_cast %135 : vector<1x32x1xf32> to vector<32x1xf32>
    %137 = vector.broadcast %136 : vector<32x1xf32> to vector<32x256xf32>
    %138 = arith.addf %134, %137 : vector<32x256xf32>
    %c128 = arith.constant 128 : index
    %c0_72 = arith.constant 0 : index
    %139 = vector.load %arg9[%c128, %c0_72] : memref<384x256xf32, #tpu.memory_space<vmem>>, vector<32x256xf32>
    %c320 = arith.constant 320 : index
    %c0_73 = arith.constant 0 : index
    %140 = vector.load %arg9[%c320, %c0_73] : memref<384x256xf32, #tpu.memory_space<vmem>>, vector<32x256xf32>
    %cst_74 = arith.constant dense<0.000000e+00> : vector<32xf32>
    %141 = vector.multi_reduction <add>, %138, %cst_74 [1] : vector<32x256xf32> to vector<32xf32>
    %142 = vector.shape_cast %141 : vector<32xf32> to vector<32x1xf32>
    %cst_75 = arith.constant 3.906250e-03 : f32
    %143 = vector.broadcast %cst_75 : f32 to vector<32x1xf32>
    %144 = arith.mulf %142, %143 : vector<32x1xf32>
    %145 = arith.mulf %138, %138 : vector<32x256xf32>
    %cst_76 = arith.constant dense<0.000000e+00> : vector<32xf32>
    %146 = vector.multi_reduction <add>, %145, %cst_76 [1] : vector<32x256xf32> to vector<32xf32>
    %147 = vector.shape_cast %146 : vector<32xf32> to vector<32x1xf32>
    %cst_77 = arith.constant 3.906250e-03 : f32
    %148 = vector.broadcast %cst_77 : f32 to vector<32x1xf32>
    %149 = arith.mulf %147, %148 : vector<32x1xf32>
    %150 = arith.mulf %144, %144 : vector<32x1xf32>
    %151 = arith.subf %149, %150 : vector<32x1xf32>
    %cst_78 = arith.constant 0.000000e+00 : f32
    %152 = vector.broadcast %cst_78 : f32 to vector<32x1xf32>
    %153 = arith.maximumf %151, %152 : vector<32x1xf32>
    %cst_79 = arith.constant 9.99999974E-6 : f32
    %154 = vector.broadcast %cst_79 : f32 to vector<32x1xf32>
    %155 = arith.addf %153, %154 : vector<32x1xf32>
    %156 = math.rsqrt %155 : vector<32x1xf32>
    %157 = vector.broadcast %144 : vector<32x1xf32> to vector<32x256xf32>
    %158 = arith.subf %138, %157 : vector<32x256xf32>
    %159 = vector.broadcast %156 : vector<32x1xf32> to vector<32x256xf32>
    %160 = arith.mulf %158, %159 : vector<32x256xf32>
    %161 = arith.mulf %139, %160 : vector<32x256xf32>
    %162 = arith.addf %161, %140 : vector<32x256xf32>
    %cst_80 = arith.constant 0.000000e+00 : f32
    %163 = vector.broadcast %cst_80 : f32 to vector<32x256xf32>
    %164 = arith.maximumf %162, %163 : vector<32x256xf32>
    %c4 = arith.constant 4 : index
    %c0_81 = arith.constant 0 : index
    %c0_82 = arith.constant 0 : index
    %165 = vector.load %arg4[%c4, %c0_81, %c0_82] : memref<5x32x32xf32, #tpu.memory_space<vmem>>, vector<1x32x32xf32>
    %166 = vector.shape_cast %165 : vector<1x32x32xf32> to vector<32x32xf32>
    %cst_83 = arith.constant dense<0.000000e+00> : vector<32x256xf32>
    %167 = tpu.matmul %166, %164, %cst_83 {dimension_numbers = #tpu.dot_dimension_numbers<[1], [0], [0], [1], [0, 0, 1, 1], [], []>} : vector<32x32xf32>, vector<32x256xf32>, vector<32x256xf32> -> vector<32x256xf32>
    %c4_84 = arith.constant 4 : index
    %c0_85 = arith.constant 0 : index
    %c0_86 = arith.constant 0 : index
    %168 = vector.load %arg5[%c4_84, %c0_85, %c0_86] : memref<5x32x1xf32, #tpu.memory_space<vmem>>, vector<1x32x1xf32>
    %169 = vector.shape_cast %168 : vector<1x32x1xf32> to vector<32x1xf32>
    %170 = vector.broadcast %169 : vector<32x1xf32> to vector<32x256xf32>
    %171 = arith.addf %167, %170 : vector<32x256xf32>
    %c160 = arith.constant 160 : index
    %c0_87 = arith.constant 0 : index
    %172 = vector.load %arg9[%c160, %c0_87] : memref<384x256xf32, #tpu.memory_space<vmem>>, vector<32x256xf32>
    %c352 = arith.constant 352 : index
    %c0_88 = arith.constant 0 : index
    %173 = vector.load %arg9[%c352, %c0_88] : memref<384x256xf32, #tpu.memory_space<vmem>>, vector<32x256xf32>
    %cst_89 = arith.constant dense<0.000000e+00> : vector<32xf32>
    %174 = vector.multi_reduction <add>, %171, %cst_89 [1] : vector<32x256xf32> to vector<32xf32>
    %175 = vector.shape_cast %174 : vector<32xf32> to vector<32x1xf32>
    %cst_90 = arith.constant 3.906250e-03 : f32
    %176 = vector.broadcast %cst_90 : f32 to vector<32x1xf32>
    %177 = arith.mulf %175, %176 : vector<32x1xf32>
    %178 = arith.mulf %171, %171 : vector<32x256xf32>
    %cst_91 = arith.constant dense<0.000000e+00> : vector<32xf32>
    %179 = vector.multi_reduction <add>, %178, %cst_91 [1] : vector<32x256xf32> to vector<32xf32>
    %180 = vector.shape_cast %179 : vector<32xf32> to vector<32x1xf32>
    %cst_92 = arith.constant 3.906250e-03 : f32
    %181 = vector.broadcast %cst_92 : f32 to vector<32x1xf32>
    %182 = arith.mulf %180, %181 : vector<32x1xf32>
    %183 = arith.mulf %177, %177 : vector<32x1xf32>
    %184 = arith.subf %182, %183 : vector<32x1xf32>
    %cst_93 = arith.constant 0.000000e+00 : f32
    %185 = vector.broadcast %cst_93 : f32 to vector<32x1xf32>
    %186 = arith.maximumf %184, %185 : vector<32x1xf32>
    %cst_94 = arith.constant 9.99999974E-6 : f32
    %187 = vector.broadcast %cst_94 : f32 to vector<32x1xf32>
    %188 = arith.addf %186, %187 : vector<32x1xf32>
    %189 = math.rsqrt %188 : vector<32x1xf32>
    %190 = vector.broadcast %177 : vector<32x1xf32> to vector<32x256xf32>
    %191 = arith.subf %171, %190 : vector<32x256xf32>
    %192 = vector.broadcast %189 : vector<32x1xf32> to vector<32x256xf32>
    %193 = arith.mulf %191, %192 : vector<32x256xf32>
    %194 = arith.mulf %172, %193 : vector<32x256xf32>
    %195 = arith.addf %194, %173 : vector<32x256xf32>
    %cst_95 = arith.constant 0.000000e+00 : f32
    %196 = vector.broadcast %cst_95 : f32 to vector<32x256xf32>
    %197 = arith.maximumf %195, %196 : vector<32x256xf32>
    %c0_96 = arith.constant 0 : index
    %c0_97 = arith.constant 0 : index
    %198 = vector.load %arg6[%c0_96, %c0_97] : memref<32x1xf32, #tpu.memory_space<vmem>>, vector<32x1xf32>
    %199 = vector.broadcast %198 : vector<32x1xf32> to vector<32x256xf32>
    %200 = arith.mulf %197, %199 : vector<32x256xf32>
    %cst_98 = arith.constant dense<0.000000e+00> : vector<256xf32>
    %201 = vector.multi_reduction <add>, %200, %cst_98 [0] : vector<32x256xf32> to vector<256xf32>
    %202 = vector.shape_cast %201 : vector<256xf32> to vector<1x256xf32>
    %c0_99 = arith.constant 0 : index
    %c0_100 = arith.constant 0 : index
    %203 = vector.load %arg7[%c0_99, %c0_100] : memref<1x1xf32, #tpu.memory_space<vmem>>, vector<1x1xf32>
    %204 = vector.broadcast %203 : vector<1x1xf32> to vector<1x256xf32>
    %205 = arith.addf %202, %204 : vector<1x256xf32>
    %c0_101 = arith.constant 0 : index
    %c0_102 = arith.constant 0 : index
    %206 = vector.load %arg8[%c0_101, %c0_102] : memref<1x256xf32, #tpu.memory_space<vmem>>, vector<1x256xf32>
    tpu.vector_store %arg8[%c0_101, %c0_102], %205 {strides = array<i32>} : memref<1x256xf32, #tpu.memory_space<vmem>>, vector<1x256xf32>,
    return
  }
}

</mosaic_0001>

<bundles_post_ra>
// kernel: tpu_custom_call.1
= control target key start
LH: loop header
LB: loop body
LE: loop exit
PB: predicated region body
PF: predicated region fallthrough
CT: control target
= control target key end

     0   :  { %s3605_s0 = inlined_call_operand.hbm [shape: f32[4,256], index: 0, kind: input, shape index: {}]   ;;  %s3606_s1 = inlined_call_operand.hbm [shape: f32[10,256], index: 1, kind: input, shape index: {}]   ;;  %s3607_s2 = inlined_call_operand.hbm [shape: f32[32,4], index: 2, kind: input, shape index: {}]   ;;  %s3608_s3 = inlined_call_operand.hbm [shape: f32[384,10], index: 3, kind: input, shape index: {}]   ;;  %s3609_s4 = inlined_call_operand.hbm [shape: f32[5,32,32], index: 4, kind: input, shape index: {}]   ;;  %s3610_s5 = inlined_call_operand.hbm [shape: f32[5,32,1], index: 5, kind: input, shape index: {}]   ;;  %s3611_s6 = inlined_call_operand.hbm [shape: f32[32,1], index: 6, kind: input, shape index: {}]   ;;  %s3612_s7 = inlined_call_operand.<no memory space> [shape: f32[1,1], index: 7, kind: input, shape index: {}]   ;;  %s3613_s8 = inlined_call_operand.hbm [shape: f32[1,256], index: 8, kind: output, shape index: {}]  }
   0x1   :  { %v13_v0 = vstv %s3612_s7 }
   0x2   :  { %14 = vst [vmem:[#allocation3] sm:$0x1] %v13_v0 }
   0x3   :  { %15 = vsyncpa [#allocation5], 0 }
   0x4   :  { %16 = vsyncpa [#allocation8], 0 }
   0x5   :  { %17 = vsyncpa [#allocation11], 0 }
   0x6   :  { %18 = vsyncpa [#allocation14], 0 }
   0x7   :  { %19 = vsyncpa [#allocation6], 0  ;;  %s2722_s29 = smov [#allocation7]   ;;  %s2536_s11 = scalar_lea.hbm %s3606_s1, 512 }
   0x8   :  { %s35_s30 = sshll.u32 %s2722_s29, 4  ;;  %p2537_p0 = scmp.ne.s32.totalorder %s3606_s1, %s2536_s11  ;;  %s36_s30 = int_to_ptr.vmem [resolvable:$true] %s35_s30 }
   0x9   :  { %p2540_p1 = scmp.lt.u32.totalorder %s2536_s11, %s3606_s1 }
   0xb   :  { %p2542_p2 = pnand %p2540_p1, %p2537_p0 }
   0xd   :  { %2545 = shalt.err (!%p2542_p2)
}
   0xe   :  { %s2546_s7 = scalar_lea.vmem %s36_s30, 512  ;;  %p2551_p4 = scmp.lt.s32.totalorder %s36_s30, %s36_s30 }
   0xf   :  { %p2547_p3 = scmp.ne.s32.totalorder %s36_s30, %s2546_s7  ;;  %p2552_p5 = scmp.lt.s32.totalorder %s2546_s7, %s2546_s7 }
  0x11   :  { %p2553_p6 = por %p2552_p5, %p2551_p4 }
  0x13   :  { %p2554_p7 = pnand %p2553_p6, %p2547_p3 }
  0x15   :  { %2557 = shalt.err (!%p2554_p7)
}
  0x16   :  { %s2723_s16 = smov 256   ;;  %s2724_s17 = smov 16  }
  0x17   :  { %41 = dma.hbm_to_vmem [thread:$0]  %s3606_s1, 512, %s36_s30, [#allocation8], %s2723_s16, %s2723_s16, %s2724_s17  }
  0x18   :  { %s2725_s20 = smov [#allocation10]   ;;  %s2726_s22 = smov [#allocation13]  }
  0x19   :  { %s59_s21 = sshll.u32 %s2725_s20, 4  ;;  %s83_s23 = sshll.u32 %s2726_s22, 4  ;;  %s60_s21 = int_to_ptr.vmem [resolvable:$true] %s59_s21  ;;  %s84_s23 = int_to_ptr.vmem [resolvable:$true] %s83_s23 }
  0x1a   :  { %s2558_s26 = scalar_lea.hbm %s3608_s3, 6144 }
  0x1b   :  { %p2559_p8 = scmp.ne.s32.totalorder %s3608_s3, %s2558_s26  ;;  %p2562_p9 = scmp.lt.u32.totalorder %s2558_s26, %s3608_s3 }
  0x1d   :  { %p2564_p10 = pnand %p2562_p9, %p2559_p8 }
  0x1f   :  { %2567 = shalt.err (!%p2564_p10)
}
  0x20   :  { %s2568_s1 = scalar_lea.vmem %s60_s21, 6144  ;;  %p2573_p12 = scmp.lt.s32.totalorder %s60_s21, %s60_s21 }
  0x21   :  { %p2569_p11 = scmp.ne.s32.totalorder %s60_s21, %s2568_s1  ;;  %p2574_p13 = scmp.lt.s32.totalorder %s2568_s1, %s2568_s1 }
  0x23   :  { %p2575_p0 = por %p2574_p13, %p2573_p12 }
  0x25   :  { %p2576_p1 = pnand %p2575_p0, %p2569_p11 }
  0x27   :  { %2579 = shalt.err (!%p2576_p1)
}
  0x28   :  { %s2727_s30 = smov 128   ;;  %s2728_s10 = smov 8  }
  0x29   :  { %65 = dma.hbm_to_vmem [thread:$0]  %s3608_s3, 6144, %s60_s21, [#allocation11], %s2727_s30, %s2727_s30, %s2728_s10  }
  0x2a   :  { %s2580_s15 = scalar_lea.hbm %s3610_s5, 2560 }
  0x2b   :  { %p2581_p2 = scmp.ne.s32.totalorder %s3610_s5, %s2580_s15  ;;  %p2584_p3 = scmp.lt.u32.totalorder %s2580_s15, %s3610_s5 }
  0x2d   :  { %p2586_p4 = pnand %p2584_p3, %p2581_p2 }
  0x2f   :  { %2589 = shalt.err (!%p2586_p4)
}
  0x30   :  { %s2590_s19 = scalar_lea.vmem %s84_s23, 2560  ;;  %p2595_p6 = scmp.lt.s32.totalorder %s84_s23, %s84_s23 }
  0x31   :  { %p2591_p5 = scmp.ne.s32.totalorder %s84_s23, %s2590_s19  ;;  %p2596_p7 = scmp.lt.s32.totalorder %s2590_s19, %s2590_s19 }
  0x33   :  { %p2597_p8 = por %p2596_p7, %p2595_p6 }
  0x35   :  { %p2598_p9 = pnand %p2597_p8, %p2591_p5 }
  0x37   :  { %2601 = shalt.err (!%p2598_p9)
}
  0x38   :  { %89 = dma.hbm_to_vmem [thread:$0]  %s3610_s5, 2560, %s84_s23, [#allocation14], %s2727_s30, %s2727_s30, %s2728_s10  }
  0x39   :  { %s2729_s21 = smov [#allocation4]   ;;  %s2730_s24 = smov [#allocation9]  }
  0x3a   :  { %s26_s22 = sshll.u32 %s2729_s21, 4  ;;  %s47_s25 = sshll.u32 %s2730_s24, 4  ;;  %s27_s22 = int_to_ptr.vmem [resolvable:$true] %s26_s22  ;;  %s48_s25 = int_to_ptr.vmem [resolvable:$true] %s47_s25 }
  0x3b   :  { %s2602_s28 = scalar_lea.hbm %s3605_s0, 128 }
  0x3c   :  { %p2603_p10 = scmp.ne.s32.totalorder %s3605_s0, %s2602_s28  ;;  %p2606_p11 = scmp.lt.u32.totalorder %s2602_s28, %s3605_s0 }
  0x3e   :  { %p2608_p12 = pnand %p2606_p11, %p2603_p10 }
  0x40   :  { %2611 = shalt.err (!%p2608_p12)
}
  0x41   :  { %s2612_s5 = scalar_lea.vmem %s27_s22, 128  ;;  %p2617_p0 = scmp.lt.s32.totalorder %s27_s22, %s27_s22 }
  0x42   :  { %p2613_p13 = scmp.ne.s32.totalorder %s27_s22, %s2612_s5  ;;  %p2618_p1 = scmp.lt.s32.totalorder %s2612_s5, %s2612_s5 }
  0x44   :  { %p2619_p2 = por %p2618_p1, %p2617_p0 }
  0x46   :  { %p2620_p3 = pnand %p2619_p2, %p2613_p13 }
  0x48   :  { %2623 = shalt.err (!%p2620_p3)
}
  0x49   :  { %29 = dma.hbm_to_vmem [thread:$0]  %s3605_s0, 128, %s27_s22, [#allocation5]  }
  0x4a   :  { %s2624_s15 = scalar_lea.hbm %s3607_s2, 512 }
  0x4b   :  { %p2625_p4 = scmp.ne.s32.totalorder %s3607_s2, %s2624_s15  ;;  %p2628_p5 = scmp.lt.u32.totalorder %s2624_s15, %s3607_s2 }
  0x4d   :  { %p2630_p6 = pnand %p2628_p5, %p2625_p4 }
  0x4f   :  { %2633 = shalt.err (!%p2630_p6)
}
  0x50   :  { %s2634_s19 = scalar_lea.vmem %s48_s25, 512  ;;  %p2639_p8 = scmp.lt.s32.totalorder %s48_s25, %s48_s25 }
  0x51   :  { %p2635_p7 = scmp.ne.s32.totalorder %s48_s25, %s2634_s19  ;;  %p2640_p9 = scmp.lt.s32.totalorder %s2634_s19, %s2634_s19 }
  0x53   :  { %p2641_p10 = por %p2640_p9, %p2639_p8 }
  0x55   :  { %p2642_p11 = pnand %p2641_p10, %p2635_p7 }
  0x57   :  { %2645 = shalt.err (!%p2642_p11)
}
  0x58   :  { %53 = dma.hbm_to_vmem [thread:$0]  %s3607_s2, 512, %s48_s25, [#allocation8], %s2727_s30, %s2727_s30, %s2728_s10  }
  0x59   :  { %s2731_s20 = smov [#allocation12]   ;;  %s2732_s22 = smov [#allocation15]  }
  0x5a   :  { %s71_s21 = sshll.u32 %s2731_s20, 4  ;;  %s95_s24 = sshll.u32 %s2732_s22, 4  ;;  %s72_s21 = int_to_ptr.vmem [resolvable:$true] %s71_s21  ;;  %s96_s24 = int_to_ptr.vmem [resolvable:$true] %s95_s24 }
  0x5b   :  { %s2646_s28 = scalar_lea.hbm %s3609_s4, 2560 }
  0x5c   :  { %p2647_p12 = scmp.ne.s32.totalorder %s3609_s4, %s2646_s28  ;;  %p2650_p13 = scmp.lt.u32.totalorder %s2646_s28, %s3609_s4 }
  0x5e   :  { %p2652_p0 = pnand %p2650_p13, %p2647_p12 }
  0x60   :  { %2655 = shalt.err (!%p2652_p0)
}
  0x61   :  { %s2656_s2 = scalar_lea.vmem %s72_s21, 2560  ;;  %p2661_p2 = scmp.lt.s32.totalorder %s72_s21, %s72_s21 }
  0x62   :  { %p2657_p1 = scmp.ne.s32.totalorder %s72_s21, %s2656_s2  ;;  %p2662_p3 = scmp.lt.s32.totalorder %s2656_s2, %s2656_s2 }
  0x64   :  { %p2663_p4 = por %p2662_p3, %p2661_p2 }
  0x66   :  { %p2664_p5 = pnand %p2663_p4, %p2657_p1 }
  0x68   :  { %2667 = shalt.err (!%p2664_p5)
}
  0x69   :  { %77 = dma.hbm_to_vmem [thread:$0]  %s3609_s4, 2560, %s72_s21, [#allocation11], %s2727_s30, %s2727_s30, %s2728_s10  }
  0x6a   :  { %s2668_s13 = scalar_lea.hbm %s3611_s6, 512 }
  0x6b   :  { %p2669_p6 = scmp.ne.s32.totalorder %s3611_s6, %s2668_s13  ;;  %p2672_p7 = scmp.lt.u32.totalorder %s2668_s13, %s3611_s6 }
  0x6d   :  { %p2674_p8 = pnand %p2672_p7, %p2669_p6 }
  0x6f   :  { %2677 = shalt.err (!%p2674_p8)
}
  0x70   :  { %s2678_s17 = scalar_lea.vmem %s96_s24, 512  ;;  %p2683_p10 = scmp.lt.s32.totalorder %s96_s24, %s96_s24 }
  0x71   :  { %p2679_p9 = scmp.ne.s32.totalorder %s96_s24, %s2678_s17  ;;  %p2684_p11 = scmp.lt.s32.totalorder %s2678_s17, %s2678_s17 }
  0x73   :  { %p2685_p12 = por %p2684_p11, %p2683_p10 }
  0x75   :  { %p2686_p13 = pnand %p2685_p12, %p2679_p9 }
  0x77   :  { %2689 = shalt.err (!%p2686_p13)
}
  0x78   :  { %101 = dma.hbm_to_vmem [thread:$0]  %s3611_s6, 512, %s96_s24, [#allocation14], %s2727_s30, %s2727_s30, %s2728_s10  }
  0x79   :  { %2712 = dma.done.wait [#allocation5], 128  }
  0x7a   :  { %2713 = vsyncadd [#allocation5], 4294967168 }
  0x7b   :  { %2714 = dma.done.wait [#allocation8], 1024  }
  0x7c   :  { %2715 = vsyncadd [#allocation8], 4294966272 }
  0x7d   :  { %2716 = dma.done.wait [#allocation11], 8704  }
  0x7e   :  { %2717 = vsyncadd [#allocation11], 4294958592 }
  0x7f   :  { %2718 = dma.done.wait [#allocation14], 3072  }
  0x80   :  { %2719 = vsyncadd [#allocation14], 4294964224  ;;  %v3614_v1 = vmov 0.0   ;;  %vm322_vm0 = vcmask 1041408   ;;  %vm2734_vm1 = vmmov 1   ;;  %v126_v2 = vld [vmem:[#allocation7 + $0x8] sm:$0xff] }
  0x81   :  { %609 = vmatprep.mubr.f32.mxu1 %v3614_v1  ;;  %393 = vmatprep.mubr.f32.mxu0 %v3614_v1  ;;  %vm2422_vm2 = vmpackc.low %vm322_vm0, %vm2734_vm1  ;;  %v128_v3 = vld [vmem:[#allocation7 + $0x18] sm:$0x3]  ;;  %v125_v4 = vld [vmem:[#allocation7] sm:$0xff]  ;;  %vm798_vm3 = vcmask 1043456   ;;  %vm177_vm4 = vcmask 80896   ;;  %vm785_vm5 = vcmask 31744  }
  0x82   :  { %v2421_v5 = vpack.c.bf16 %v128_v3, %v126_v2  ;;  %v127_v6 = vld [vmem:[#allocation7 + $0x10] sm:$0x3]  ;;  %v782_v8 = vld [vmem:[#allocation4] sm:$0xff]  ;;  %v165_v10 = vld [vmem:[#allocation10 + $0x120] sm:$0xff]  ;;  %vm1036_vm6 = vcmask 261120   ;;  %s2737_s6 = smov [#allocation16]  }
  0x83   :  { %v2424_v7 = vpack.c.bf16 %v127_v6, %v125_v4  ;;  %v784_v9 = vcombine.high %v782_v8, %v782_v8  ;;  %v129_v11 = vld [vmem:[#allocation10] sm:$0xff]  ;;  %v166_v12 = vld [vmem:[#allocation10 + $0x128] sm:$0xff]  ;;  %v167_v14 = vld [vmem:[#allocation10 + $0x130] sm:$0xff]  ;;  %s2333_s30 = sshll.u32 %s2737_s6, 4  ;;  %s2334_s30 = int_to_ptr.vmem [resolvable:$true] %s2333_s30 }
  0x84   :  { %2467 = vmatprep.subr.msk.bf16.mxu1 %vm2422_vm2, %v2421_v5  ;;  %2423 = vmatprep.subr.msk.bf16.mxu0 %vm2422_vm2, %v2421_v5  ;;  %v130_v13 = vld [vmem:[#allocation10 + $0x8] sm:$0xff]  ;;  %v131_v15 = vld [vmem:[#allocation10 + $0x10] sm:$0xff]  ;;  %v168_v16 = vld [vmem:[#allocation10 + $0x138] sm:$0xff]  ;;  %s2690_s10 = scalar_lea.vmem %s2334_s30, 32  ;;  %p2695_p1 = scmp.lt.s32.totalorder %s2334_s30, %s2334_s30 }
  0x85   :  { %2468 = vmatpush1.bf16.msk.msra.mxu1 %vm2422_vm2, %v2424_v7  ;;  %2426 = vmatpush1.bf16.msk.msra.mxu0 %vm2422_vm2, %v2424_v7  ;;  %v132_v17 = vld [vmem:[#allocation10 + $0x18] sm:$0xff]  ;;  %v169_v18 = vld [vmem:[#allocation10 + $0x140] sm:$0xff]  ;;  %v170_v20 = vld [vmem:[#allocation10 + $0x148] sm:$0xff]  ;;  %p2691_p0 = scmp.ne.s32.totalorder %s2334_s30, %s2690_s10  ;;  %p2696_p2 = scmp.lt.s32.totalorder %s2690_s10, %s2690_s10 }
  0x86   :  { %2395 = vmatprep.subr.msk.mxu1 %vm798_vm3, %v784_v9  ;;  %v133_v19 = vld [vmem:[#allocation10 + $0x20] sm:$0xff]  ;;  %v134_v21 = vld [vmem:[#allocation10 + $0x28] sm:$0xff]  ;;  %v171_v22 = vld [vmem:[#allocation10 + $0x150] sm:$0xff] }
  0x87   :  { %v135_v23 = vld [vmem:[#allocation10 + $0x30] sm:$0xff]  ;;  %v172_v24 = vld [vmem:[#allocation10 + $0x158] sm:$0xff]  ;;  %v173_v26 = vld [vmem:[#allocation10 + $0x160] sm:$0xff]  ;;  %p2697_p3 = por %p2696_p2, %p2695_p1 }
  0x88   :  { %2383 = vmatmul.mubr.msk.f32.vlgmr.msra.gmra.mrb[0].mxu1 %vm177_vm4, %v165_v10  ;;  %2347 = vmatmul.mubr.msk.f32.vlgmr.msra.gmra.mrb[0].mxu0 %vm177_vm4, %v129_v11  ;;  %v136_v25 = vld [vmem:[#allocation10 + $0x38] sm:$0xff]  ;;  %v137_v27 = vld [vmem:[#allocation10 + $0x40] sm:$0xff]  ;;  %v174_v28 = vld [vmem:[#allocation10 + $0x168] sm:$0xff] }
  0x89   :  { %615 = vmatprep.mubr.f32.mxu1 %v3614_v1  ;;  %2396 = vmatpush1.msk.msra.mxu1 %vm798_vm3, %v782_v8  ;;  %v138_v29 = vld [vmem:[#allocation10 + $0x48] sm:$0xff]  ;;  %v175_v30 = vld [vmem:[#allocation10 + $0x170] sm:$0xff]  ;;  %v176_v32 = vld [vmem:[#allocation10 + $0x178] sm:$0xff]  ;;  %p2698_p4 = pnand %p2697_p3, %p2691_p0 }
  0x8a   :  { %399 = vmatprep.mubr.f32.mxu0 %v3614_v1  ;;  %v139_v31 = vld [vmem:[#allocation10 + $0x50] sm:$0xff]  ;;  %v140_v33 = vld [vmem:[#allocation10 + $0x58] sm:$0xff]  ;;  %v778_v34 = vld [vmem:[#allocation9] sm:$0xff] }
  0x8b   :  { %v141_v35 = vld [vmem:[#allocation10 + $0x60] sm:$0xff]  ;;  %v779_v36 = vld [vmem:[#allocation9 + $0x8] sm:$0xff]  ;;  %v780_v38 = vld [vmem:[#allocation9 + $0x10] sm:$0xff] }
  0x8c   :  { %2384 = vmatmul.mubr.msk.f32.gmra.mrb[2].mxu1 %vm177_vm4, %v166_v12  ;;  %2348 = vmatmul.mubr.msk.f32.gmra.mrb[2].mxu0 %vm177_vm4, %v130_v13  ;;  %v142_v37 = vld [vmem:[#allocation10 + $0x68] sm:$0xff]  ;;  %v143_v39 = vld [vmem:[#allocation10 + $0x70] sm:$0xff]  ;;  %v781_v40 = vld [vmem:[#allocation9 + $0x18] sm:$0xff] }
  0x8d   :  { %621 = vmatprep.mubr.f32.mxu1 %v3614_v1  ;;  %405 = vmatprep.mubr.f32.mxu0 %v3614_v1  ;;  %v144_v41 = vld [vmem:[#allocation10 + $0x78] sm:$0xff]  ;;  %v145_v42 = vld [vmem:[#allocation10 + $0x80] sm:$0xff]  ;;  %v146_v43 = vld [vmem:[#allocation10 + $0x88] sm:$0xff] }
  0x8e   :  { %v147_v44 = vld [vmem:[#allocation10 + $0x90] sm:$0xff]  ;;  %v148_v45 = vld [vmem:[#allocation10 + $0x98] sm:$0xff]  ;;  %v149_v46 = vld [vmem:[#allocation10 + $0xa0] sm:$0xff] }
  0x8f   :  { %v150_v47 = vld [vmem:[#allocation10 + $0xa8] sm:$0xff]  ;;  %v151_v48 = vld [vmem:[#allocation10 + $0xb0] sm:$0xff]  ;;  %v152_v49 = vld [vmem:[#allocation10 + $0xb8] sm:$0xff] }
  0x90   :  { %2385 = vmatmul.mubr.msk.f32.gmra.mrb[4].mxu1 %vm177_vm4, %v167_v14  ;;  %2349 = vmatmul.mubr.msk.f32.gmra.mrb[4].mxu0 %vm177_vm4, %v131_v15  ;;  %v153_v50 = vld [vmem:[#allocation10 + $0xc0] sm:$0xff]  ;;  %v154_v51 = vld [vmem:[#allocation10 + $0xc8] sm:$0xff]  ;;  %v155_v52 = vld [vmem:[#allocation10 + $0xd0] sm:$0xff] }
  0x91   :  { %627 = vmatprep.mubr.f32.mxu1 %v3614_v1  ;;  %411 = vmatprep.mubr.f32.mxu0 %v3614_v1  ;;  %v156_v53 = vld [vmem:[#allocation10 + $0xd8] sm:$0xff] }
  0x94   :  { %2386 = vmatmul.mubr.msk.f32.gmra.mrb[6].mxu1 %vm177_vm4, %v168_v16  ;;  %2350 = vmatmul.mubr.msk.f32.gmra.mrb[6].mxu0 %vm177_vm4, %v132_v17 }
  0x95   :  { %633 = vmatprep.mubr.f32.mxu1 %v3614_v1  ;;  %417 = vmatprep.mubr.f32.mxu0 %v3614_v1 }
  0x98   :  { %2387 = vmatmul.mubr.msk.f32.gmra.mrb[8].mxu1 %vm177_vm4, %v169_v18  ;;  %2351 = vmatmul.mubr.msk.f32.gmra.mrb[8].mxu0 %vm177_vm4, %v133_v19 }
  0x99   :  { %639 = vmatprep.mubr.f32.mxu1 %v3614_v1  ;;  %423 = vmatprep.mubr.f32.mxu0 %v3614_v1 }
  0x9c   :  { %2388 = vmatmul.mubr.msk.f32.gmra.mrb[10].mxu1 %vm177_vm4, %v170_v20  ;;  %2352 = vmatmul.mubr.msk.f32.gmra.mrb[10].mxu0 %vm177_vm4, %v134_v21 }
  0x9d   :  { %645 = vmatprep.mubr.f32.mxu1 %v3614_v1  ;;  %429 = vmatprep.mubr.f32.mxu0 %v3614_v1 }
  0xa0   :  { %2389 = vmatmul.mubr.msk.f32.gmra.mrb[12].mxu1 %vm177_vm4, %v171_v22  ;;  %2353 = vmatmul.mubr.msk.f32.gmra.mrb[12].mxu0 %vm177_vm4, %v135_v23 }
  0xa1   :  { %651 = vmatprep.mubr.f32.mxu1 %v3614_v1  ;;  %435 = vmatprep.mubr.f32.mxu0 %v3614_v1 }
  0xa4   :  { %2390 = vmatmul.mubr.msk.f32.gmra.mrb[14].mxu1 %vm177_vm4, %v172_v24  ;;  %2354 = vmatmul.mubr.msk.f32.gmra.mrb[14].mxu0 %vm177_vm4, %v136_v25 }
  0xa5   :  { %657 = vmatprep.mubr.f32.mxu1 %v3614_v1  ;;  %441 = vmatprep.mubr.f32.mxu0 %v3614_v1 }
  0xa8   :  { %2391 = vmatmul.mubr.msk.f32.gmra.mrb[16].mxu1 %vm177_vm4, %v173_v26  ;;  %2355 = vmatmul.mubr.msk.f32.gmra.mrb[16].mxu0 %vm177_vm4, %v137_v27 }
  0xa9   :  { %663 = vmatprep.mubr.f32.mxu1 %v3614_v1  ;;  %447 = vmatprep.mubr.f32.mxu0 %v3614_v1 }
  0xac   :  { %2392 = vmatmul.mubr.msk.f32.gmra.mrb[18].mxu1 %vm177_vm4, %v174_v28  ;;  %2356 = vmatmul.mubr.msk.f32.gmra.mrb[18].mxu0 %vm177_vm4, %v138_v29 }
  0xad   :  { %669 = vmatprep.mubr.f32.mxu1 %v3614_v1  ;;  %453 = vmatprep.mubr.f32.mxu0 %v3614_v1 }
  0xb0   :  { %2393 = vmatmul.mubr.msk.f32.gmra.mrb[20].mxu1 %vm177_vm4, %v175_v30  ;;  %2357 = vmatmul.mubr.msk.f32.gmra.mrb[20].mxu0 %vm177_vm4, %v139_v31 }
  0xb1   :  { %675 = vmatprep.mubr.f32.mxu1 %v3614_v1  ;;  %459 = vmatprep.mubr.f32.mxu0 %v3614_v1 }
  0xb4   :  { %2394 = vmatmul.mubr.msk.f32.gmra.mrb[22].mxu1 %vm177_vm4, %v176_v32  ;;  %2358 = vmatmul.mubr.msk.f32.gmra.mrb[22].mxu0 %vm177_vm4, %v140_v33 }
  0xb5   :  { %867 = vmatprep.mubr.f32.mxu1 %v3614_v1  ;;  %465 = vmatprep.mubr.f32.mxu0 %v3614_v1 }
  0xb8   :  { %2397 = vmatmul.mubr.msk.f32.vlgmr.msra.gmra.mrb[24].mxu1 %vm785_vm5, %v778_v34  ;;  %2359 = vmatmul.mubr.msk.f32.gmra.mrb[24].mxu0 %vm177_vm4, %v141_v35 }
  0xb9   :  { %873 = vmatprep.mubr.f32.mxu1 %v3614_v1  ;;  %471 = vmatprep.mubr.f32.mxu0 %v3614_v1 }
  0xbc   :  { %2398 = vmatmul.mubr.msk.f32.gmra.mrb[26].mxu1 %vm785_vm5, %v779_v36  ;;  %2360 = vmatmul.mubr.msk.f32.gmra.mrb[26].mxu0 %vm177_vm4, %v142_v37 }
  0xbd   :  { %879 = vmatprep.mubr.f32.mxu1 %v3614_v1  ;;  %477 = vmatprep.mubr.f32.mxu0 %v3614_v1 }
  0xc0   :  { %2399 = vmatmul.mubr.msk.f32.gmra.mrb[28].mxu1 %vm785_vm5, %v780_v38  ;;  %2361 = vmatmul.mubr.msk.f32.gmra.mrb[28].mxu0 %vm177_vm4, %v143_v39 }
  0xc1   :  { %885 = vmatprep.mubr.f32.mxu1 %v3614_v1  ;;  %483 = vmatprep.mubr.f32.mxu0 %v3614_v1 }
  0xc4   :  { %2400 = vmatmul.mubr.msk.f32.gmra.mrb[30].mxu1 %vm785_vm5, %v781_v40  ;;  %2362 = vmatmul.mubr.msk.f32.gmra.mrb[30].mxu0 %vm177_vm4, %v144_v41 }
  0xc5   :  { %1113 = vmatprep.mubr.f32.mxu1 %v3614_v1  ;;  %489 = vmatprep.mubr.f32.mxu0 %v3614_v1 }
  0xc8   :  { %2363 = vmatmul.mubr.msk.f32.gmra.mrb[32].mxu0 %vm177_vm4, %v145_v42 }
  0xc9   :  { %495 = vmatprep.mubr.f32.mxu0 %v3614_v1 }
  0xcc   :  { %2364 = vmatmul.mubr.msk.f32.gmra.mrb[34].mxu0 %vm177_vm4, %v146_v43 }
  0xcd   :  { %501 = vmatprep.mubr.f32.mxu0 %v3614_v1 }
  0xd0   :  { %2365 = vmatmul.mubr.msk.f32.gmra.mrb[36].mxu0 %vm177_vm4, %v147_v44 }
  0xd1   :  { %507 = vmatprep.mubr.f32.mxu0 %v3614_v1 }
  0xd4   :  { %2366 = vmatmul.mubr.msk.f32.gmra.mrb[38].mxu0 %vm177_vm4, %v148_v45 }
  0xd5   :  { %513 = vmatprep.mubr.f32.mxu0 %v3614_v1 }
  0xd8   :  { %2367 = vmatmul.mubr.msk.f32.gmra.mrb[40].mxu0 %vm177_vm4, %v149_v46 }
  0xd9   :  { %519 = vmatprep.mubr.f32.mxu0 %v3614_v1 }
  0xdc   :  { %2368 = vmatmul.mubr.msk.f32.gmra.mrb[42].mxu0 %vm177_vm4, %v150_v47 }
  0xdd   :  { %525 = vmatprep.mubr.f32.mxu0 %v3614_v1 }
  0xe0   :  { %2369 = vmatmul.mubr.msk.f32.gmra.mrb[44].mxu0 %vm177_vm4, %v151_v48 }
  0xe1   :  { %531 = vmatprep.mubr.f32.mxu0 %v3614_v1 }
  0xe4   :  { %2370 = vmatmul.mubr.msk.f32.gmra.mrb[46].mxu0 %vm177_vm4, %v152_v49 }
  0xe5   :  { %537 = vmatprep.mubr.f32.mxu0 %v3614_v1 }
  0xe8   :  { %2371 = vmatmul.mubr.msk.f32.gmra.mrb[48].mxu0 %vm177_vm4, %v153_v50 }
  0xe9   :  { %543 = vmatprep.mubr.f32.mxu0 %v3614_v1 }
  0xec   :  { %2372 = vmatmul.mubr.msk.f32.gmra.mrb[50].mxu0 %vm177_vm4, %v154_v51 }
  0xed   :  { %549 = vmatprep.mubr.f32.mxu0 %v3614_v1 }
  0xf0   :  { %2373 = vmatmul.mubr.msk.f32.gmra.mrb[52].mxu0 %vm177_vm4, %v155_v52 }
  0xf1   :  { %555 = vmatprep.mubr.f32.mxu0 %v3614_v1 }
  0xf4   :  { %2374 = vmatmul.mubr.msk.f32.gmra.mrb[54].mxu0 %vm177_vm4, %v156_v53 }
  0xf5   :  { %561 = vmatprep.mubr.f32.mxu0 %v3614_v1 }
 0x15b   :  { %v2975_v54 = vpop.f32.mrb[0].mxu1  ;;  %v2979_v56 = vpop.f32.mrb[0].mxu0 }
 0x15c   :  { %3616 = vst [vmem:[#allocation22_spill] sm:$0xff] %v2975_v54  ;;  %v2977_v55 = vpop.f32.mrb[1].mxu1  ;;  %v2981_v57 = vpop.f32.mrb[1].mxu0 }
 0x15d   :  { %3617 = vst [vmem:[#allocation23_spill] sm:$0xff] %v2977_v55 }
 0x15f   :  { %v2983_v58 = vpop.f32.mrb[2].mxu1  ;;  %v2987_v60 = vpop.f32.mrb[2].mxu0 }
 0x160   :  { %3618 = vst [vmem:[#allocation24_spill] sm:$0xff] %v2983_v58  ;;  %v2985_v59 = vpop.f32.mrb[3].mxu1  ;;  %v2989_v61 = vpop.f32.mrb[3].mxu0 }
 0x161   :  { %3619 = vst [vmem:[#allocation25_spill] sm:$0xff] %v2985_v59 }
 0x163   :  { %v2991_v62 = vpop.f32.mrb[4].mxu1  ;;  %v2995_v0 = vpop.f32.mrb[4].mxu0 }
 0x164   :  { %3620 = vst [vmem:[#allocation26_spill] sm:$0xff] %v2991_v62  ;;  %v2993_v63 = vpop.f32.mrb[5].mxu1  ;;  %v2997_v2 = vpop.f32.mrb[5].mxu0 }
 0x165   :  { %3621 = vst [vmem:[#allocation27_spill] sm:$0xff] %v2993_v63 }
 0x167   :  { %v2999_v3 = vpop.f32.mrb[6].mxu1  ;;  %v3003_v5 = vpop.f32.mrb[6].mxu0 }
 0x168   :  { %3622 = vst [vmem:[#allocation28_spill] sm:$0xff] %v2999_v3  ;;  %v3001_v4 = vpop.f32.mrb[7].mxu1  ;;  %v3005_v6 = vpop.f32.mrb[7].mxu0  ;;  %v159_v3 = vld [vmem:[#allocation10 + $0xf0] sm:$0xff] }
 0x169   :  { %3623 = vst [vmem:[#allocation29_spill] sm:$0xff] %v3001_v4 }
 0x16b   :  { %v3007_v7 = vpop.f32.mrb[8].mxu1  ;;  %v3011_v9 = vpop.f32.mrb[8].mxu0 }
 0x16c   :  { %3624 = vst [vmem:[#allocation30_spill] sm:$0xff] %v3007_v7  ;;  %v3009_v8 = vpop.f32.mrb[9].mxu1  ;;  %v3013_v10 = vpop.f32.mrb[9].mxu0  ;;  %v1014_v7 = vld [vmem:[#allocation13 + $0x10] sm:$0xff] }
 0x16d   :  { %3625 = vst [vmem:[#allocation31_spill] sm:$0xff] %v3009_v8  ;;  %v3664_v8 = vmov 0.0  }
 0x16f   :  { %v3015_v11 = vpop.f32.mrb[10].mxu1  ;;  %v3019_v13 = vpop.f32.mrb[10].mxu0 }
 0x170   :  { %3626 = vst [vmem:[#allocation32_spill] sm:$0xff] %v3015_v11  ;;  %v3017_v12 = vpop.f32.mrb[11].mxu1  ;;  %v3021_v14 = vpop.f32.mrb[11].mxu0 }
 0x171   :  { %3627 = vst [vmem:[#allocation33_spill] sm:$0xff] %v3017_v12 }
 0x173   :  { %v3023_v15 = vpop.f32.mrb[12].mxu1  ;;  %v3027_v17 = vpop.f32.mrb[12].mxu0 }
 0x174   :  { %3628 = vst [vmem:[#allocation34_spill] sm:$0xff] %v3023_v15  ;;  %v3025_v16 = vpop.f32.mrb[13].mxu1  ;;  %v3029_v18 = vpop.f32.mrb[13].mxu0 }
 0x175   :  { %3629 = vst [vmem:[#allocation35_spill] sm:$0xff] %v3025_v16 }
 0x177   :  { %v3031_v19 = vpop.f32.mrb[14].mxu1  ;;  %v3035_v21 = vpop.f32.mrb[14].mxu0 }
 0x178   :  { %3630 = vst [vmem:[#allocation36_spill] sm:$0xff] %v3031_v19  ;;  %v3033_v20 = vpop.f32.mrb[15].mxu1  ;;  %v3037_v22 = vpop.f32.mrb[15].mxu0 }
 0x179   :  { %3631 = vst [vmem:[#allocation37_spill] sm:$0xff] %v3033_v20 }
 0x17b   :  { %v3039_v23 = vpop.f32.mrb[16].mxu1  ;;  %v3043_v25 = vpop.f32.mrb[16].mxu0 }
 0x17c   :  { %3632 = vst [vmem:[#allocation38_spill] sm:$0xff] %v3039_v23  ;;  %v3041_v24 = vpop.f32.mrb[17].mxu1  ;;  %v3045_v26 = vpop.f32.mrb[17].mxu0 }
 0x17d   :  { %3633 = vst [vmem:[#allocation39_spill] sm:$0xff] %v3041_v24 }
 0x17f   :  { %v3047_v27 = vpop.f32.mrb[18].mxu1  ;;  %v3051_v29 = vpop.f32.mrb[18].mxu0 }
 0x180   :  { %3634 = vst [vmem:[#allocation40_spill] sm:$0xff] %v3047_v27  ;;  %v3049_v28 = vpop.f32.mrb[19].mxu1  ;;  %v3053_v30 = vpop.f32.mrb[19].mxu0 }
 0x181   :  { %3635 = vst [vmem:[#allocation41_spill] sm:$0xff] %v3049_v28 }
 0x183   :  { %v3055_v31 = vpop.f32.mrb[20].mxu1  ;;  %v3059_v33 = vpop.f32.mrb[20].mxu0 }
 0x184   :  { %3636 = vst [vmem:[#allocation42_spill] sm:$0xff] %v3055_v31  ;;  %v3057_v32 = vpop.f32.mrb[21].mxu1  ;;  %v3061_v34 = vpop.f32.mrb[21].mxu0 }
 0x185   :  { %3637 = vst [vmem:[#allocation43_spill] sm:$0xff] %v3057_v32 }
 0x187   :  { %v3063_v35 = vpop.f32.mrb[22].mxu1  ;;  %v3067_v37 = vpop.f32.mrb[22].mxu0 }
 0x188   :  { %3638 = vst [vmem:[#allocation44_spill] sm:$0xff] %v3063_v35  ;;  %v3065_v36 = vpop.f32.mrb[23].mxu1  ;;  %v3069_v38 = vpop.f32.mrb[23].mxu0 }
 0x189   :  { %3639 = vst [vmem:[#allocation45_spill] sm:$0xff] %v3065_v36 }
 0x18b   :  { %v3071_v39 = vpop.f32.mrb[24].mxu1  ;;  %v3081_v44 = vpop.f32.mrb[24].mxu0 }
 0x18c   :  { %v3073_v40 = vpop.f32.mrb[25].mxu1  ;;  %v924_v41 = vmul.f32 %v3071_v39, %v3071_v39  ;;  %3640 = vst [vmem:[#allocation46_spill] sm:$0xff] %v3081_v44  ;;  %v3083_v45 = vpop.f32.mrb[25].mxu0 }
 0x18d   :  { %v908_v42 = vadd.f32 %v3073_v40, %v3071_v39  ;;  %v925_v43 = vmul.f32 %v3073_v40, %v3073_v40  ;;  %3641 = vst [vmem:[#allocation47_spill] sm:$0xff] %v3083_v45 }
 0x18f   :  { %909 = vadd.xlane.f32.xlu0 %v908_v42  ;;  %v3085_v46 = vpop.f32.mrb[26].mxu1  ;;  %v932_v47 = vadd.f32 %v925_v43, %v924_v41  ;;  %v3095_v52 = vpop.f32.mrb[26].mxu0 }
 0x190   :  { %v3087_v48 = vpop.f32.mrb[27].mxu1  ;;  %v926_v49 = vmul.f32 %v3085_v46, %v3085_v46  ;;  %3642 = vst [vmem:[#allocation48_spill] sm:$0xff] %v3095_v52  ;;  %v3097_v53 = vpop.f32.mrb[27].mxu0 }
 0x191   :  { %933 = vadd.xlane.f32.xlu1 %v932_v47  ;;  %v911_v50 = vadd.f32 %v3087_v48, %v3085_v46  ;;  %v927_v51 = vmul.f32 %v3087_v48, %v3087_v48  ;;  %3643 = vst [vmem:[#allocation49_spill] sm:$0xff] %v3097_v53 }
 0x193   :  { %912 = vadd.xlane.f32.xlu0 %v911_v50  ;;  %v3099_v42 = vpop.f32.mrb[28].mxu1  ;;  %v935_v41 = vadd.f32 %v927_v51, %v926_v49  ;;  %v3109_v35 = vpop.f32.mrb[28].mxu0 }
 0x194   :  { %v3101_v43 = vpop.f32.mrb[29].mxu1  ;;  %v928_v1 = vmul.f32 %v3099_v42, %v3099_v42  ;;  %3644 = vst [vmem:[#allocation50_spill] sm:$0xff] %v3109_v35  ;;  %v3111_v32 = vpop.f32.mrb[29].mxu0 }
 0x195   :  { %936 = vadd.xlane.f32.xlu1 %v935_v41  ;;  %v914_v47 = vadd.f32 %v3101_v43, %v3099_v42  ;;  %v929_v36 = vmul.f32 %v3101_v43, %v3101_v43  ;;  %3645 = vst [vmem:[#allocation51_spill] sm:$0xff] %v3111_v32 }
 0x197   :  { %915 = vadd.xlane.f32.xlu0 %v914_v47  ;;  %v3113_v50 = vpop.f32.mrb[30].mxu1  ;;  %v938_v49 = vadd.f32 %v929_v36, %v928_v1  ;;  %v3123_v27 = vpop.f32.mrb[30].mxu0 }
 0x198   :  { %v3115_v51 = vpop.f32.mrb[31].mxu1  ;;  %v930_v31 = vmul.f32 %v3113_v50, %v3113_v50  ;;  %3646 = vst [vmem:[#allocation52_spill] sm:$0xff] %v3123_v27  ;;  %v3125_v24 = vpop.f32.mrb[31].mxu0 }
 0x199   :  { %v917_v41 = vadd.f32 %v3115_v51, %v3113_v50  ;;  %v931_v28 = vmul.f32 %v3115_v51, %v3115_v51  ;;  %3647 = vst [vmem:[#allocation53_spill] sm:$0xff] %v3125_v24 }
 0x19b   :  { %939 = vadd.xlane.f32.xlu0 %v938_v49  ;;  %918 = vadd.xlane.f32.xlu1 %v917_v41  ;;  %v941_v47 = vadd.f32 %v931_v28, %v930_v31  ;;  %v3127_v23 = vpop.f32.mrb[32].mxu0 }
 0x19c   :  { %3648 = vst [vmem:[#allocation54_spill] sm:$0xff] %v3127_v23  ;;  %v3129_v1 = vpop.f32.mrb[33].mxu0  ;;  %v158_v23 = vld [vmem:[#allocation10 + $0xe8] sm:$0xff] }
 0x19d   :  { %3649 = vst [vmem:[#allocation55_spill] sm:$0xff] %v3129_v1  ;;  %v1015_v1 = vld [vmem:[#allocation13 + $0x18] sm:$0xff] }
 0x19f   :  { %942 = vadd.xlane.f32.xlu1 %v941_v47  ;;  %v3131_v36 = vpop.f32.mrb[34].mxu0 }
 0x1a0   :  { %3650 = vst [vmem:[#allocation56_spill] sm:$0xff] %v3131_v36  ;;  %v3133_v19 = vpop.f32.mrb[35].mxu0 }
 0x1a1   :  { %3651 = vst [vmem:[#allocation57_spill] sm:$0xff] %v3133_v19  ;;  %v2735_v19 = vmov 0  }
 0x1a2   :  { %2486 = vset.pattern.permute.xlu1 %v2735_v19  ;;  %2485 = vset.pattern.permute.xlu0 %v2735_v19 }
 0x1a3   :  { %v3135_v20 = vpop.f32.mrb[36].mxu0 }
 0x1a4   :  { %3652 = vst [vmem:[#allocation58_spill] sm:$0xff] %v3135_v20  ;;  %v3137_v15 = vpop.f32.mrb[37].mxu0 }
 0x1a5   :  { %3653 = vst [vmem:[#allocation59_spill] sm:$0xff] %v3137_v15 }
 0x1a7   :  { %v3139_v16 = vpop.f32.mrb[38].mxu0 }
 0x1a8   :  { %3654 = vst [vmem:[#allocation60_spill] sm:$0xff] %v3139_v16  ;;  %v3141_v11 = vpop.f32.mrb[39].mxu0 }
 0x1a9   :  { %3655 = vst [vmem:[#allocation61_spill] sm:$0xff] %v3141_v11 }
 0x1ab   :  { %v3143_v49 = vpop.f32.mrb[40].mxu0 }
 0x1ac   :  { %3656 = vst [vmem:[#allocation62_spill] sm:$0xff] %v3143_v49  ;;  %v3145_v28 = vpop.f32.mrb[41].mxu0 }
 0x1ad   :  { %3657 = vst [vmem:[#allocation63_spill] sm:$0xff] %v3145_v28 }
 0x1af   :  { %v3147_v31 = vpop.f32.mrb[42].mxu0 }
 0x1b0   :  { %3658 = vst [vmem:[#allocation64_spill] sm:$0xff] %v3147_v31  ;;  %v3149_v41 = vpop.f32.mrb[43].mxu0 }
 0x1b1   :  { %3659 = vst [vmem:[#allocation65_spill] sm:$0xff] %v3149_v41 }
 0x1b3   :  { %v3151_v47 = vpop.f32.mrb[44].mxu0 }
 0x1b4   :  { %3660 = vst [vmem:[#allocation66_spill] sm:$0xff] %v3151_v47  ;;  %v3153_v12 = vpop.f32.mrb[45].mxu0 }
 0x1b5   :  { %3661 = vst [vmem:[#allocation67_spill] sm:$0xff] %v3153_v12  ;;  %v1013_v12 = vld [vmem:[#allocation13 + $0x8] sm:$0xff] }
 0x1b6   :  { %1023 = vperm.xlu1 %2486, %v1013_v12   ;;  %v160_v12 = vld [vmem:[#allocation10 + $0xf8] sm:$0xff] }
 0x1b7   :  { %v3155_v36 = vpop.f32.mrb[46].mxu0 }
 0x1b8   :  { %3662 = vst [vmem:[#allocation68_spill] sm:$0xff] %v3155_v36  ;;  %v3157_v20 = vpop.f32.mrb[47].mxu0  ;;  %v1012_v36 = vld [vmem:[#allocation13] sm:$0xff] }
 0x1b9   :  { %3663 = vst [vmem:[#allocation69_spill] sm:$0xff] %v3157_v20  ;;  %v157_v20 = vld [vmem:[#allocation10 + $0xe0] sm:$0xff]  ;;  %1018 = vperm.xlu0 %2485, %v1012_v36  }
 0x1ba   :  { %2375 = vmatmul.mubr.msk.f32.gmra.mrb[56].mxu0 %vm177_vm4, %v157_v20  ;;  %1028 = vperm.xlu1 %2486, %v1014_v7  }
 0x1bb   :  { %v3159_v15 = vpop.f32.mrb[48].mxu0  ;;  %567 = vmatprep.mubr.f32.mxu0 %v3664_v8 }
 0x1bc   :  { %v3161_v16 = vpop.f32.mrb[49].mxu0 }
 0x1be   :  { %2376 = vmatmul.mubr.msk.f32.gmra.mrb[58].mxu0 %vm177_vm4, %v158_v23  ;;  %1033 = vperm.xlu1 %2486, %v1015_v1  }
 0x1bf   :  { %v3163_v11 = vpop.f32.mrb[50].mxu0  ;;  %573 = vmatprep.mubr.f32.mxu0 %v3664_v8 }
 0x1c0   :  { %v3165_v49 = vpop.f32.mrb[51].mxu0 }
 0x1c2   :  { %2377 = vmatmul.mubr.msk.f32.gmra.mrb[60].mxu0 %vm177_vm4, %v159_v3 }
 0x1c3   :  { %v3167_v28 = vpop.f32.mrb[52].mxu0  ;;  %579 = vmatprep.mubr.f32.mxu0 %v3664_v8 }
 0x1c4   :  { %v3169_v31 = vpop.f32.mrb[53].mxu0 }
 0x1c6   :  { %2378 = vmatmul.mubr.msk.f32.gmra.mrb[62].mxu0 %vm177_vm4, %v160_v12 }
 0x1c7   :  { %v3171_v41 = vpop.f32.mrb[54].mxu0  ;;  %585 = vmatprep.mubr.f32.mxu0 %v3664_v8 }
 0x1c8   :  { %v3173_v47 = vpop.f32.mrb[55].mxu0 }
 0x21c   :  { %v910_v19 = vpop.xlane.xlu0 %909 }
 0x21d   :  { %v920_v20 = vmul.f32 0.00390625, %v910_v19 }
 0x21e   :  { %v934_v36 = vpop.xlane.xlu1 %933 }
 0x21f   :  { %v944_v7 = vmul.f32 0.00390625, %v934_v36  ;;  %v948_v4 = vmul.f32 %v920_v20, %v920_v20 }
 0x220   :  { %v913_v62 = vpop.xlane.xlu0 %912 }
 0x221   :  { %v952_v23 = vsub.f32 %v944_v7, %v948_v4  ;;  %v921_v27 = vmul.f32 0.00390625, %v913_v62 }
 0x222   :  { %v937_v63 = vpop.xlane.xlu1 %936 }
 0x223   :  { %v956_v24 = vmax.f32 %v952_v23, 0.0  ;;  %v945_v1 = vmul.f32 0.00390625, %v937_v63  ;;  %v949_v35 = vmul.f32 %v921_v27, %v921_v27 }
 0x224   :  { %v916_v3 = vpop.xlane.xlu0 %915 }
 0x225   :  { %v960_v32 = vadd.f32 1e-05, %v956_v24  ;;  %v922_v58 = vmul.f32 0.00390625, %v916_v3  ;;  %v953_v59 = vsub.f32 %v945_v1, %v949_v35  ;;  %v968_v24 = vsub.f32 %v3071_v39, %v920_v20 }
 0x226   :  { %v969_v35 = vsub.f32 %v3073_v40, %v920_v20 }
 0x227   :  { %2488 = vrsqrt.f32 %v960_v32  ;;  %v957_v12 = vmax.f32 %v953_v59, 0.0  ;;  %v950_v54 = vmul.f32 %v922_v58, %v922_v58 }
 0x228   :  { %v940_v52 = vpop.xlane.xlu0 %939  ;;  %v919_v53 = vpop.xlane.xlu1 %918 }
 0x229   :  { %v946_v19 = vmul.f32 0.00390625, %v940_v52  ;;  %v923_v55 = vmul.f32 0.00390625, %v919_v53  ;;  %v961_v36 = vadd.f32 1e-05, %v957_v12  ;;  %v971_v12 = vsub.f32 %v3087_v48, %v921_v27 }
 0x22b   :  { %v954_v44 = vsub.f32 %v946_v19, %v950_v54  ;;  %2490 = vrsqrt.f32 %v961_v36  ;;  %v951_v7 = vmul.f32 %v923_v55, %v923_v55 }
 0x22c   :  { %v943_v4 = vpop.xlane.xlu1 %942 }
 0x22d   :  { %v958_v62 = vmax.f32 %v954_v44, 0.0  ;;  %v947_v23 = vmul.f32 0.00390625, %v943_v4  ;;  %v970_v44 = vsub.f32 %v3085_v46, %v921_v27 }
 0x22f   :  { %v962_v63 = vadd.f32 1e-05, %v958_v62  ;;  %v955_v45 = vsub.f32 %v947_v23, %v951_v7 }
 0x231   :  { %v2489_v32 = vpop.eup %2488  ;;  %2492 = vrsqrt.f32 %v962_v63  ;;  %v959_v59 = vmax.f32 %v955_v45, 0.0 }
 0x232   :  { %v976_v1 = vmul.f32 %v2489_v32, %v968_v24  ;;  %v977_v3 = vmul.f32 %v2489_v32, %v969_v35  ;;  %v974_v24 = vsub.f32 %v3113_v50, %v923_v55 }
 0x233   :  { %v963_v52 = vadd.f32 1e-05, %v959_v59 }
 0x234   :  { %v984_v53 = vmul.f32 %v976_v1, %v2979_v56  ;;  %v985_v54 = vmul.f32 %v977_v3, %v2981_v57  ;;  %v972_v56 = vsub.f32 %v3099_v42, %v922_v58  ;;  %v973_v57 = vsub.f32 %v3101_v43, %v922_v58 }
 0x235   :  { %2494 = vrsqrt.f32 %v963_v52  ;;  %v2491_v19 = vpop.eup %2490 }
 0x236   :  { %v992_v39 = vadd.f32 %v984_v53, %v3159_v15  ;;  %v993_v40 = vadd.f32 %v985_v54, %v3161_v16  ;;  %v978_v20 = vmul.f32 %v2491_v19, %v970_v44  ;;  %v979_v36 = vmul.f32 %v2491_v19, %v971_v12  ;;  %v1024_v19 = vpop.permute.xlu1 %1023 }
 0x238   :  { %v986_v45 = vmul.f32 %v978_v20, %v2987_v60  ;;  %v987_v4 = vmul.f32 %v979_v36, %v2989_v61  ;;  %v1000_v15 = vmax.f32 %v992_v39, 0.0  ;;  %v1001_v23 = vmax.f32 %v993_v40, 0.0 }
 0x239   :  { %v975_v60 = vsub.f32 %v3115_v51, %v923_v55 }
 0x23a   :  { %v994_v46 = vadd.f32 %v986_v45, %v3163_v11  ;;  %v995_v27 = vadd.f32 %v987_v4, %v3165_v49 }
 0x23b   :  { %v2493_v62 = vpop.eup %2492 }
 0x23c   :  { %v980_v48 = vmul.f32 %v2493_v62, %v972_v56  ;;  %v981_v7 = vmul.f32 %v2493_v62, %v973_v57  ;;  %v1002_v16 = vmax.f32 %v994_v46, 0.0  ;;  %v1003_v63 = vmax.f32 %v995_v27, 0.0  ;;  %v1029_v46 = vpop.permute.xlu1 %1028 }
 0x23e   :  { %v988_v61 = vmul.f32 %v980_v48, %v2995_v0  ;;  %v989_v42 = vmul.f32 %v981_v7, %v2997_v2  ;;  %v2429_v43 = vpack.c.bf16 %v1002_v16, %v1000_v15  ;;  %v2427_v35 = vpack.c.bf16 %v1003_v63, %v1001_v23 }
 0x23f   :  { %v2495_v58 = vpop.eup %2494 }
 0x240   :  { %v996_v11 = vadd.f32 %v988_v61, %v3167_v28  ;;  %v997_v49 = vadd.f32 %v989_v42, %v3169_v31  ;;  %v982_v32 = vmul.f32 %v2495_v58, %v974_v24  ;;  %v983_v59 = vmul.f32 %v2495_v58, %v975_v60  ;;  %2428 = vmatprep.subr.bf16.mxu1 %v2427_v35  ;;  %v1008_v31 = vld [vmem:[#allocation12] sm:$0xff]  ;;  %v1034_v35 = vpop.permute.xlu1 %1033 }
 0x241   :  { %2430 = vmatpush1.bf16.msra.mxu1 %v2429_v43 }
 0x242   :  { %v990_v1 = vmul.f32 %v982_v32, %v3003_v5  ;;  %v991_v50 = vmul.f32 %v983_v59, %v3005_v6  ;;  %v1004_v2 = vmax.f32 %v996_v11, 0.0  ;;  %v1005_v51 = vmax.f32 %v997_v49, 0.0  ;;  %v1009_v5 = vld [vmem:[#allocation12 + $0x8] sm:$0xff]  ;;  %v1010_v6 = vld [vmem:[#allocation12 + $0x10] sm:$0xff] }
 0x244   :  { %v998_v55 = vadd.f32 %v990_v1, %v3171_v41  ;;  %v999_v0 = vadd.f32 %v991_v50, %v3173_v47  ;;  %v1011_v41 = vld [vmem:[#allocation12 + $0x18] sm:$0xff]  ;;  %v1019_v47 = vpop.permute.xlu0 %1018 }
 0x246   :  { %v1006_v3 = vmax.f32 %v998_v55, 0.0  ;;  %v1007_v52 = vmax.f32 %v999_v0, 0.0  ;;  %v1260_v0 = vld [vmem:[#allocation13 + $0x20] sm:$0xff] }
 0x248   :  { %v2433_v53 = vpack.c.bf16 %v1006_v3, %v1004_v2  ;;  %v2431_v28 = vpack.c.bf16 %v1007_v52, %v1005_v51  ;;  %v1263_v2 = vld [vmem:[#allocation13 + $0x38] sm:$0xff]  ;;  %v1261_v51 = vld [vmem:[#allocation13 + $0x28] sm:$0xff]  ;;  %v1262_v3 = vld [vmem:[#allocation13 + $0x30] sm:$0xff] }
 0x24a   :  { %2432 = vmatprep.subr.bf16.mxu1 %v2431_v28 }
 0x24b   :  { %2434 = vmatpush1.bf16.msra.mxu1 %v2433_v53 }
 0x24e   :  { %2401 = vmatmul.mubr.msk.f32.vlgmr.msra.gmra.mrb[32].mxu1 %vm1036_vm6, %v1008_v31 }
 0x24f   :  { %1119 = vmatprep.mubr.f32.mxu1 %v3664_v8 }
 0x252   :  { %2402 = vmatmul.mubr.msk.f32.gmra.mrb[34].mxu1 %vm1036_vm6, %v1009_v5 }
 0x253   :  { %1125 = vmatprep.mubr.f32.mxu1 %v3664_v8 }
 0x256   :  { %2403 = vmatmul.mubr.msk.f32.gmra.mrb[36].mxu1 %vm1036_vm6, %v1010_v6 }
 0x257   :  { %1131 = vmatprep.mubr.f32.mxu1 %v3664_v8 }
 0x25a   :  { %2404 = vmatmul.mubr.msk.f32.gmra.mrb[38].mxu1 %vm1036_vm6, %v1011_v41 }
 0x25b   :  { %1360 = vmatprep.mubr.f32.mxu1 %v3664_v8 }
 0x28d   :  { %v3255_v52 = vpop.f32.mrb[56].mxu0 }
 0x28e   :  { %v3257_v53 = vpop.f32.mrb[57].mxu0 }
 0x291   :  { %v3259_v28 = vpop.f32.mrb[58].mxu0 }
 0x292   :  { %v3261_v31 = vpop.f32.mrb[59].mxu0 }
 0x295   :  { %v3263_v5 = vpop.f32.mrb[60].mxu0 }
 0x296   :  { %v3265_v6 = vpop.f32.mrb[61].mxu0 }
 0x299   :  { %v3267_v41 = vpop.f32.mrb[62].mxu0 }
 0x321   :  { %v1115_v54 = vpop.f32.mrb[32].mxu1 }
 0x322   :  { %v3215_v44 = vadd.f32 %v1115_v54, %v1019_v47  ;;  %v1117_v12 = vpop.f32.mrb[33].mxu1  ;;  %v161_v54 = vld [vmem:[#allocation10 + $0x100] sm:$0xff] }
 0x323   :  { %v3217_v39 = vadd.f32 %v1117_v12, %v1019_v47  ;;  %v3269_v47 = vpop.f32.mrb[63].mxu0  ;;  %2379 = vmatmul.mubr.msk.f32.gmra.mrb[64].mxu0 %vm177_vm4, %v161_v54  ;;  %v162_v12 = vld [vmem:[#allocation10 + $0x108] sm:$0xff] }
 0x324   :  { %v1170_v36 = vmul.f32 %v3215_v44, %v3215_v44  ;;  %591 = vmatprep.mubr.f32.mxu0 %v3664_v8 }
 0x325   :  { %v1121_v40 = vpop.f32.mrb[34].mxu1  ;;  %v1154_v20 = vadd.f32 %v3217_v39, %v3215_v44  ;;  %v1171_v45 = vmul.f32 %v3217_v39, %v3217_v39 }
 0x326   :  { %v3225_v4 = vadd.f32 %v1121_v40, %v1024_v19  ;;  %v1123_v56 = vpop.f32.mrb[35].mxu1  ;;  %v164_v40 = vld [vmem:[#allocation10 + $0x118] sm:$0xff] }
 0x327   :  { %v3227_v57 = vadd.f32 %v1123_v56, %v1024_v19  ;;  %1155 = vadd.xlane.f32.xlu1 %v1154_v20  ;;  %v1178_v7 = vadd.f32 %v1171_v45, %v1170_v36  ;;  %2380 = vmatmul.mubr.msk.f32.gmra.mrb[66].mxu0 %vm177_vm4, %v162_v12  ;;  %v163_v19 = vld [vmem:[#allocation10 + $0x110] sm:$0xff] }
 0x328   :  { %v1172_v62 = vmul.f32 %v3225_v4, %v3225_v4  ;;  %597 = vmatprep.mubr.f32.mxu0 %v3664_v8 }
 0x329   :  { %v1127_v27 = vpop.f32.mrb[36].mxu1  ;;  %v1157_v48 = vadd.f32 %v3227_v57, %v3225_v4  ;;  %v1173_v15 = vmul.f32 %v3227_v57, %v3227_v57 }
 0x32a   :  { %v3235_v23 = vadd.f32 %v1127_v27, %v1029_v46  ;;  %v1129_v16 = vpop.f32.mrb[37].mxu1 }
 0x32b   :  { %v3237_v63 = vadd.f32 %v1129_v16, %v1029_v46  ;;  %1158 = vadd.xlane.f32.xlu0 %v1157_v48  ;;  %1179 = vadd.xlane.f32.xlu1 %v1178_v7  ;;  %v1181_v24 = vadd.f32 %v1173_v15, %v1172_v62 }
 0x32c   :  { %v1174_v60 = vmul.f32 %v3235_v23, %v3235_v23  ;;  %2381 = vmatmul.mubr.msk.f32.gmra.mrb[68].mxu0 %vm177_vm4, %v163_v19 }
 0x32d   :  { %v1133_v61 = vpop.f32.mrb[38].mxu1  ;;  %v1175_v42 = vmul.f32 %v3237_v63, %v3237_v63  ;;  %v1160_v32 = vadd.f32 %v3237_v63, %v3235_v23  ;;  %603 = vmatprep.mubr.f32.mxu0 %v3664_v8 }
 0x32e   :  { %v1135_v58 = vpop.f32.mrb[39].mxu1  ;;  %v3243_v11 = vadd.f32 %v1133_v61, %v1034_v35 }
 0x32f   :  { %1182 = vadd.xlane.f32.xlu1 %v1181_v24  ;;  %v1184_v43 = vadd.f32 %v1175_v42, %v1174_v60  ;;  %v3245_v49 = vadd.f32 %v1135_v58, %v1034_v35 }
 0x330   :  { %v1176_v1 = vmul.f32 %v3243_v11, %v3243_v11  ;;  %2382 = vmatmul.mubr.msk.f32.gmra.mrb[70].mxu0 %vm177_vm4, %v164_v40 }
 0x331   :  { %1185 = vadd.xlane.f32.xlu0 %v1184_v43  ;;  %v1163_v59 = vadd.f32 %v3245_v49, %v3243_v11  ;;  %v1177_v50 = vmul.f32 %v3245_v49, %v3245_v49 }
 0x333   :  { %1161 = vadd.xlane.f32.xlu1 %v1160_v32  ;;  %v1187_v55 = vadd.f32 %v1177_v50, %v1176_v1 }
 0x337   :  { %1164 = vadd.xlane.f32.xlu1 %v1163_v59 }
 0x33b   :  { %1188 = vadd.xlane.f32.xlu1 %v1187_v55 }
 0x347   :  { %1266 = vperm.xlu0 %2485, %v1260_v0  }
 0x34b   :  { %1281 = vperm.xlu0 %2485, %v1263_v2  }
 0x34c   :  { %1271 = vperm.xlu1 %2486, %v1261_v51  }
 0x350   :  { %1276 = vperm.xlu1 %2486, %v1262_v3  }
 0x3b4   :  { %v1156_v20 = vpop.xlane.xlu1 %1155 }
 0x3b5   :  { %v1166_v36 = vmul.f32 0.00390625, %v1156_v20 }
 0x3b7   :  { %v1194_v46 = vmul.f32 %v1166_v36, %v1166_v36  ;;  %v1214_v19 = vsub.f32 %v3215_v44, %v1166_v36  ;;  %v1215_v40 = vsub.f32 %v3217_v39, %v1166_v36 }
 0x3b8   :  { %v1159_v45 = vpop.xlane.xlu0 %1158  ;;  %v1180_v56 = vpop.xlane.xlu1 %1179 }
 0x3b9   :  { %v1167_v62 = vmul.f32 0.00390625, %v1159_v45  ;;  %v1190_v27 = vmul.f32 0.00390625, %v1180_v56 }
 0x3bb   :  { %v1198_v48 = vsub.f32 %v1190_v27, %v1194_v46  ;;  %v1195_v7 = vmul.f32 %v1167_v62, %v1167_v62 }
 0x3bc   :  { %v1183_v15 = vpop.xlane.xlu1 %1182 }
 0x3bd   :  { %v1202_v16 = vmax.f32 %v1198_v48, 0.0  ;;  %v1191_v24 = vmul.f32 0.00390625, %v1183_v15  ;;  %v1216_v48 = vsub.f32 %v3225_v4, %v1167_v62 }
 0x3be   :  { %v1186_v42 = vpop.xlane.xlu0 %1185 }
 0x3bf   :  { %v1206_v60 = vadd.f32 1e-05, %v1202_v16  ;;  %v1199_v61 = vsub.f32 %v1191_v24, %v1195_v7  ;;  %v1192_v59 = vmul.f32 0.00390625, %v1186_v42  ;;  %v1217_v7 = vsub.f32 %v3227_v57, %v1167_v62 }
 0x3c0   :  { %v1162_v58 = vpop.xlane.xlu1 %1161 }
 0x3c1   :  { %2496 = vrsqrt.f32 %v1206_v60  ;;  %v1203_v43 = vmax.f32 %v1199_v61, 0.0  ;;  %v1168_v35 = vmul.f32 0.00390625, %v1162_v58 }
 0x3c3   :  { %v1207_v32 = vadd.f32 1e-05, %v1203_v43  ;;  %v1196_v1 = vmul.f32 %v1168_v35, %v1168_v35  ;;  %v1218_v4 = vsub.f32 %v3235_v23, %v1168_v35  ;;  %v1219_v57 = vsub.f32 %v3237_v63, %v1168_v35 }
 0x3c4   :  { %v1165_v50 = vpop.xlane.xlu1 %1164 }
 0x3c5   :  { %2498 = vrsqrt.f32 %v1207_v32  ;;  %v1200_v55 = vsub.f32 %v1192_v59, %v1196_v1  ;;  %v1169_v0 = vmul.f32 0.00390625, %v1165_v50 }
 0x3c7   :  { %v1204_v2 = vmax.f32 %v1200_v55, 0.0  ;;  %v1197_v54 = vmul.f32 %v1169_v0, %v1169_v0  ;;  %v1220_v23 = vsub.f32 %v3243_v11, %v1169_v0  ;;  %v1221_v63 = vsub.f32 %v3245_v49, %v1169_v0 }
 0x3c8   :  { %v1189_v51 = vpop.xlane.xlu1 %1188 }
 0x3c9   :  { %v1208_v3 = vadd.f32 1e-05, %v1204_v2  ;;  %v1193_v12 = vmul.f32 0.00390625, %v1189_v51 }
 0x3cb   :  { %v2497_v20 = vpop.eup %2496  ;;  %2500 = vrsqrt.f32 %v1208_v3  ;;  %v1201_v45 = vsub.f32 %v1193_v12, %v1197_v54 }
 0x3cc   :  { %v1222_v56 = vmul.f32 %v2497_v20, %v1214_v19  ;;  %v1223_v46 = vmul.f32 %v2497_v20, %v1215_v40 }
 0x3cd   :  { %v1205_v27 = vmax.f32 %v1201_v45, 0.0 }
 0x3ce   :  { %v1230_v15 = vmul.f32 %v1222_v56, %v3011_v9  ;;  %v1231_v16 = vmul.f32 %v1223_v46, %v3013_v10  ;;  %v1272_v46 = vpop.permute.xlu1 %1271 }
 0x3cf   :  { %v2499_v24 = vpop.eup %2498  ;;  %v1209_v60 = vadd.f32 1e-05, %v1205_v27 }
 0x3d0   :  { %v1238_v44 = vadd.f32 %v1230_v15, %v3255_v52  ;;  %v1239_v39 = vadd.f32 %v1231_v16, %v3257_v53  ;;  %v1224_v36 = vmul.f32 %v2499_v24, %v1216_v48  ;;  %v1225_v61 = vmul.f32 %v2499_v24, %v1217_v7 }
 0x3d1   :  { %2502 = vrsqrt.f32 %v1209_v60 }
 0x3d2   :  { %v1232_v42 = vmul.f32 %v1224_v36, %v3019_v13  ;;  %v1233_v58 = vmul.f32 %v1225_v61, %v3021_v14  ;;  %v1246_v43 = vmax.f32 %v1238_v44, 0.0  ;;  %v1247_v52 = vmax.f32 %v1239_v39, 0.0 }
 0x3d4   :  { %v1240_v9 = vadd.f32 %v1232_v42, %v3259_v28  ;;  %v1241_v10 = vadd.f32 %v1233_v58, %v3261_v31  ;;  %v1277_v42 = vpop.permute.xlu1 %1276 }
 0x3d5   :  { %v2501_v62 = vpop.eup %2500 }
 0x3d6   :  { %v1248_v32 = vmax.f32 %v1240_v9, 0.0  ;;  %v1249_v53 = vmax.f32 %v1241_v10, 0.0  ;;  %v1226_v59 = vmul.f32 %v2501_v62, %v1218_v4  ;;  %v1227_v1 = vmul.f32 %v2501_v62, %v1219_v57 }
 0x3d8   :  { %v2437_v50 = vpack.c.bf16 %v1248_v32, %v1246_v43  ;;  %v2435_v55 = vpack.c.bf16 %v1249_v53, %v1247_v52  ;;  %v1234_v13 = vmul.f32 %v1226_v59, %v3027_v17  ;;  %v1235_v14 = vmul.f32 %v1227_v1, %v3029_v18 }
 0x3da   :  { %v1242_v28 = vadd.f32 %v1234_v13, %v3263_v5  ;;  %v1243_v31 = vadd.f32 %v1235_v14, %v3265_v6  ;;  %2436 = vmatprep.subr.bf16.mxu1 %v2435_v55  ;;  %v1255_v6 = vld [vmem:[#allocation12 + $0x20] sm:$0xff] }
 0x3db   :  { %v2503_v35 = vpop.eup %2502  ;;  %2438 = vmatpush1.bf16.msra.mxu1 %v2437_v50 }
 0x3dc   :  { %v1228_v2 = vmul.f32 %v2503_v35, %v1220_v23  ;;  %v1229_v51 = vmul.f32 %v2503_v35, %v1221_v63  ;;  %v1250_v11 = vmax.f32 %v1242_v28, 0.0  ;;  %v1251_v12 = vmax.f32 %v1243_v31, 0.0  ;;  %v1508_v28 = vld [vmem:[#allocation13 + $0x48] sm:$0xff]  ;;  %v1507_v31 = vld [vmem:[#allocation13 + $0x40] sm:$0xff]  ;;  %v1509_v35 = vld [vmem:[#allocation13 + $0x50] sm:$0xff] }
 0x3de   :  { %v1236_v3 = vmul.f32 %v1228_v2, %v3035_v21  ;;  %v1237_v54 = vmul.f32 %v1229_v51, %v3037_v22  ;;  %v1256_v21 = vld [vmem:[#allocation12 + $0x28] sm:$0xff]  ;;  %v1257_v22 = vld [vmem:[#allocation12 + $0x30] sm:$0xff]  ;;  %v1510_v2 = vld [vmem:[#allocation13 + $0x58] sm:$0xff] }
 0x3e0   :  { %v1244_v17 = vadd.f32 %v1236_v3, %v3267_v41  ;;  %v1245_v18 = vadd.f32 %v1237_v54, %v3269_v47  ;;  %v1258_v41 = vld [vmem:[#allocation12 + $0x38] sm:$0xff]  ;;  %v1267_v47 = vpop.permute.xlu0 %1266 }
 0x3e2   :  { %v1252_v49 = vmax.f32 %v1244_v17, 0.0  ;;  %v1253_v0 = vmax.f32 %v1245_v18, 0.0 }
 0x3e4   :  { %v2441_v5 = vpack.c.bf16 %v1252_v49, %v1250_v11  ;;  %v2439_v19 = vpack.c.bf16 %v1253_v0, %v1251_v12  ;;  %v1282_v62 = vpop.permute.xlu0 %1281 }
 0x3e6   :  { %2440 = vmatprep.subr.bf16.mxu1 %v2439_v19 }
 0x3e7   :  { %2442 = vmatpush1.bf16.msra.mxu1 %v2441_v5 }
 0x3ea   :  { %2405 = vmatmul.mubr.msk.f32.vlgmr.msra.gmra.mrb[40].mxu1 %vm1036_vm6, %v1255_v6 }
 0x3eb   :  { %1366 = vmatprep.mubr.f32.mxu1 %v3664_v8 }
 0x3ee   :  { %2406 = vmatmul.mubr.msk.f32.gmra.mrb[42].mxu1 %vm1036_vm6, %v1256_v21 }
 0x3ef   :  { %1372 = vmatprep.mubr.f32.mxu1 %v3664_v8 }
 0x3f2   :  { %2407 = vmatmul.mubr.msk.f32.gmra.mrb[44].mxu1 %vm1036_vm6, %v1257_v22 }
 0x3f3   :  { %1378 = vmatprep.mubr.f32.mxu1 %v3664_v8 }
 0x3f6   :  { %2408 = vmatmul.mubr.msk.f32.gmra.mrb[46].mxu1 %vm1036_vm6, %v1258_v41  ;;  %v587_v51 = vpop.f32.mrb[64].mxu0 }
 0x3f7   :  { %1607 = vmatprep.mubr.f32.mxu1 %v3664_v8  ;;  %v589_v3 = vpop.f32.mrb[65].mxu0 }
 0x3fa   :  { %v593_v54 = vpop.f32.mrb[66].mxu0 }
 0x3fb   :  { %v595_v17 = vpop.f32.mrb[67].mxu0 }
 0x3ff   :  { %v3350_v18 = vpop.f32.mrb[68].mxu0 }
 0x400   :  { %v3352_v11 = vpop.f32.mrb[69].mxu0 }
 0x403   :  { %v3354_v12 = vpop.f32.mrb[70].mxu0 }
 0x404   :  { %v3356_v49 = vpop.f32.mrb[71].mxu0 }
 0x4bd   :  { %v1362_v40 = vpop.f32.mrb[40].mxu1 }
 0x4be   :  { %v3310_v20 = vadd.f32 %v1362_v40, %v1267_v47  ;;  %v1364_v45 = vpop.f32.mrb[41].mxu1 }
 0x4bf   :  { %v3312_v56 = vadd.f32 %v1364_v45, %v1267_v47 }
 0x4c0   :  { %v1417_v27 = vmul.f32 %v3310_v20, %v3310_v20 }
 0x4c1   :  { %v1368_v48 = vpop.f32.mrb[42].mxu1  ;;  %v1401_v7 = vadd.f32 %v3312_v56, %v3310_v20  ;;  %v1418_v15 = vmul.f32 %v3312_v56, %v3312_v56 }
 0x4c2   :  { %v3320_v16 = vadd.f32 %v1368_v48, %v1272_v46  ;;  %v1370_v24 = vpop.f32.mrb[43].mxu1 }
 0x4c3   :  { %v3322_v60 = vadd.f32 %v1370_v24, %v1272_v46  ;;  %1402 = vadd.xlane.f32.xlu1 %v1401_v7  ;;  %v1425_v44 = vadd.f32 %v1418_v15, %v1417_v27 }
 0x4c4   :  { %v1419_v39 = vmul.f32 %v3320_v16, %v3320_v16 }
 0x4c5   :  { %v1374_v36 = vpop.f32.mrb[44].mxu1  ;;  %1426 = vadd.xlane.f32.xlu0 %v1425_v44  ;;  %v1420_v61 = vmul.f32 %v3322_v60, %v3322_v60  ;;  %v1404_v9 = vadd.f32 %v3322_v60, %v3320_v16 }
 0x4c6   :  { %v1376_v58 = vpop.f32.mrb[45].mxu1  ;;  %v3328_v4 = vadd.f32 %v1374_v36, %v1277_v42 }
 0x4c7   :  { %v3330_v57 = vadd.f32 %v1376_v58, %v1277_v42  ;;  %v1428_v10 = vadd.f32 %v1420_v61, %v1419_v39 }
 0x4c8   :  { %v1421_v1 = vmul.f32 %v3328_v4, %v3328_v4 }
 0x4c9   :  { %v1380_v43 = vpop.f32.mrb[46].mxu1  ;;  %1405 = vadd.xlane.f32.xlu0 %v1404_v9  ;;  %1429 = vadd.xlane.f32.xlu1 %v1428_v10  ;;  %v1407_v59 = vadd.f32 %v3330_v57, %v3328_v4  ;;  %v1422_v50 = vmul.f32 %v3330_v57, %v3330_v57 }
 0x4ca   :  { %v3334_v52 = vadd.f32 %v1380_v43, %v1282_v62  ;;  %v1382_v32 = vpop.f32.mrb[47].mxu1 }
 0x4cb   :  { %v3336_v53 = vadd.f32 %v1382_v32, %v1282_v62  ;;  %v1431_v23 = vadd.f32 %v1422_v50, %v1421_v1 }
 0x4cc   :  { %v1423_v13 = vmul.f32 %v3334_v52, %v3334_v52 }
 0x4cd   :  { %1408 = vadd.xlane.f32.xlu0 %v1407_v59  ;;  %v1410_v55 = vadd.f32 %v3336_v53, %v3334_v52  ;;  %v1424_v14 = vmul.f32 %v3336_v53, %v3336_v53 }
 0x4cf   :  { %1411 = vadd.xlane.f32.xlu1 %v1410_v55  ;;  %v1434_v63 = vadd.f32 %v1424_v14, %v1423_v13 }
 0x4d1   :  { %1432 = vadd.xlane.f32.xlu0 %v1431_v23 }
 0x4d3   :  { %1435 = vadd.xlane.f32.xlu1 %v1434_v63 }
 0x4e4   :  { %1518 = vperm.xlu1 %2486, %v1508_v28  }
 0x4e7   :  { %1513 = vperm.xlu0 %2485, %v1507_v31  }
 0x4e8   :  { %1523 = vperm.xlu1 %2486, %v1509_v35  }
 0x4eb   :  { %1528 = vperm.xlu0 %2485, %v1510_v2  }
 0x550   :  { %v1403_v0 = vpop.xlane.xlu1 %1402 }
 0x551   :  { %v1413_v5 = vmul.f32 0.00390625, %v1403_v0 }
 0x552   :  { %v1427_v19 = vpop.xlane.xlu0 %1426 }
 0x553   :  { %v1437_v6 = vmul.f32 0.00390625, %v1427_v19  ;;  %v1441_v21 = vmul.f32 %v1413_v5, %v1413_v5  ;;  %v1461_v50 = vsub.f32 %v3310_v20, %v1413_v5  ;;  %v1462_v55 = vsub.f32 %v3312_v56, %v1413_v5 }
 0x555   :  { %v1445_v22 = vsub.f32 %v1437_v6, %v1441_v21 }
 0x556   :  { %v1406_v41 = vpop.xlane.xlu0 %1405  ;;  %v1430_v47 = vpop.xlane.xlu1 %1429 }
 0x557   :  { %v1449_v40 = vmax.f32 %v1445_v22, 0.0  ;;  %v1414_v45 = vmul.f32 0.00390625, %v1406_v41  ;;  %v1438_v48 = vmul.f32 0.00390625, %v1430_v47 }
 0x559   :  { %v1453_v46 = vadd.f32 1e-05, %v1449_v40  ;;  %v1442_v27 = vmul.f32 %v1414_v45, %v1414_v45  ;;  %v1463_v0 = vsub.f32 %v3320_v16, %v1414_v45  ;;  %v1464_v19 = vsub.f32 %v3322_v60, %v1414_v45 }
 0x55a   :  { %v1409_v7 = vpop.xlane.xlu0 %1408 }
 0x55b   :  { %2504 = vrsqrt.f32 %v1453_v46  ;;  %v1446_v15 = vsub.f32 %v1438_v48, %v1442_v27  ;;  %v1415_v24 = vmul.f32 0.00390625, %v1409_v7 }
 0x55c   :  { %v1412_v44 = vpop.xlane.xlu1 %1411 }
 0x55d   :  { %v1450_v39 = vmax.f32 %v1446_v15, 0.0  ;;  %v1416_v36 = vmul.f32 0.00390625, %v1412_v44  ;;  %v1443_v58 = vmul.f32 %v1415_v24, %v1415_v24  ;;  %v1465_v47 = vsub.f32 %v3328_v4, %v1415_v24 }
 0x55e   :  { %v1433_v61 = vpop.xlane.xlu0 %1432 }
 0x55f   :  { %v1454_v42 = vadd.f32 1e-05, %v1450_v39  ;;  %v1439_v9 = vmul.f32 0.00390625, %v1433_v61  ;;  %v1444_v43 = vmul.f32 %v1416_v36, %v1416_v36  ;;  %v1467_v7 = vsub.f32 %v3334_v52, %v1416_v36 }
 0x560   :  { %v1436_v10 = vpop.xlane.xlu1 %1435 }
 0x561   :  { %2506 = vrsqrt.f32 %v1454_v42  ;;  %v1447_v62 = vsub.f32 %v1439_v9, %v1443_v58  ;;  %v1440_v32 = vmul.f32 0.00390625, %v1436_v10 }
 0x563   :  { %v1451_v59 = vmax.f32 %v1447_v62, 0.0  ;;  %v1448_v1 = vsub.f32 %v1440_v32, %v1444_v43 }
 0x564   :  { %v1519_v32 = vpop.permute.xlu1 %1518 }
 0x565   :  { %v2505_v13 = vpop.eup %2504  ;;  %v1455_v14 = vadd.f32 1e-05, %v1451_v59  ;;  %v1452_v23 = vmax.f32 %v1448_v1, 0.0 }
 0x566   :  { %v1469_v63 = vmul.f32 %v2505_v13, %v1461_v50  ;;  %v1470_v28 = vmul.f32 %v2505_v13, %v1462_v55 }
 0x567   :  { %2508 = vrsqrt.f32 %v1455_v14  ;;  %v1456_v31 = vadd.f32 1e-05, %v1452_v23 }
 0x568   :  { %v1477_v35 = vmul.f32 %v1469_v63, %v3043_v25  ;;  %v1478_v2 = vmul.f32 %v1470_v28, %v3045_v26  ;;  %v1466_v25 = vsub.f32 %v3330_v57, %v1415_v24 }
 0x569   :  { %2510 = vrsqrt.f32 %v1456_v31 }
 0x56a   :  { %v1485_v6 = vadd.f32 %v1477_v35, %v587_v51  ;;  %v1486_v20 = vadd.f32 %v1478_v2, %v589_v3  ;;  %v1524_v2 = vpop.permute.xlu1 %1523 }
 0x56b   :  { %v2507_v21 = vpop.eup %2506 }
 0x56c   :  { %v1471_v56 = vmul.f32 %v2507_v21, %v1463_v0  ;;  %v1472_v5 = vmul.f32 %v2507_v21, %v1464_v19  ;;  %v1493_v27 = vmax.f32 %v1485_v6, 0.0  ;;  %v1494_v16 = vmax.f32 %v1486_v20, 0.0 }
 0x56e   :  { %v1479_v22 = vmul.f32 %v1471_v56, %v3051_v29  ;;  %v1480_v41 = vmul.f32 %v1472_v5, %v3053_v30  ;;  %v1468_v29 = vsub.f32 %v3336_v53, %v1416_v36 }
 0x570   :  { %v1487_v40 = vadd.f32 %v1479_v22, %v593_v54  ;;  %v1488_v26 = vadd.f32 %v1480_v41, %v595_v17 }
 0x571   :  { %v2509_v46 = vpop.eup %2508 }
 0x572   :  { %v1495_v48 = vmax.f32 %v1487_v40, 0.0  ;;  %v1496_v60 = vmax.f32 %v1488_v26, 0.0  ;;  %v1473_v51 = vmul.f32 %v2509_v46, %v1465_v47  ;;  %v1474_v3 = vmul.f32 %v2509_v46, %v1466_v25 }
 0x573   :  { %v2511_v45 = vpop.eup %2510 }
 0x574   :  { %v2445_v15 = vpack.c.bf16 %v1495_v48, %v1493_v27  ;;  %v2443_v30 = vpack.c.bf16 %v1496_v60, %v1494_v16  ;;  %v1481_v4 = vmul.f32 %v1473_v51, %v3059_v33  ;;  %v1482_v57 = vmul.f32 %v1474_v3, %v3061_v34  ;;  %v1755_v51 = vld [vmem:[#allocation13 + $0x68] sm:$0xff]  ;;  %v1754_v3 = vld [vmem:[#allocation13 + $0x60] sm:$0xff] }
 0x575   :  { %v1475_v54 = vmul.f32 %v2511_v45, %v1467_v7  ;;  %v1476_v17 = vmul.f32 %v2511_v45, %v1468_v29  ;;  %v1756_v45 = vld [vmem:[#allocation13 + $0x70] sm:$0xff]  ;;  %v1757_v7 = vld [vmem:[#allocation13 + $0x78] sm:$0xff] }
 0x576   :  { %v1489_v24 = vadd.f32 %v1481_v4, %v3350_v18  ;;  %v1490_v44 = vadd.f32 %v1482_v57, %v3352_v11  ;;  %2444 = vmatprep.subr.bf16.mxu1 %v2443_v30  ;;  %v1502_v18 = vld [vmem:[#allocation12 + $0x40] sm:$0xff]  ;;  %v1505_v11 = vld [vmem:[#allocation12 + $0x58] sm:$0xff] }
 0x577   :  { %v1483_v39 = vmul.f32 %v1475_v54, %v3067_v37  ;;  %v1484_v61 = vmul.f32 %v1476_v17, %v3069_v38  ;;  %2446 = vmatpush1.bf16.msra.mxu1 %v2445_v15  ;;  %v1503_v37 = vld [vmem:[#allocation12 + $0x48] sm:$0xff]  ;;  %v1504_v38 = vld [vmem:[#allocation12 + $0x50] sm:$0xff] }
 0x578   :  { %v1497_v36 = vmax.f32 %v1489_v24, 0.0  ;;  %v1498_v33 = vmax.f32 %v1490_v44, 0.0 }
 0x579   :  { %v1491_v52 = vadd.f32 %v1483_v39, %v3354_v12  ;;  %v1492_v53 = vadd.f32 %v1484_v61, %v3356_v49  ;;  %v1514_v12 = vpop.permute.xlu0 %1513 }
 0x57b   :  { %v1499_v42 = vmax.f32 %v1491_v52, 0.0  ;;  %v1500_v34 = vmax.f32 %v1492_v53, 0.0 }
 0x57d   :  { %v2449_v58 = vpack.c.bf16 %v1499_v42, %v1497_v36  ;;  %v2447_v9 = vpack.c.bf16 %v1500_v34, %v1498_v33  ;;  %v1529_v56 = vpop.permute.xlu0 %1528 }
 0x57f   :  { %2448 = vmatprep.subr.bf16.mxu1 %v2447_v9 }
 0x580   :  { %2450 = vmatpush1.bf16.msra.mxu1 %v2449_v58 }
 0x583   :  { %2409 = vmatmul.mubr.msk.f32.vlgmr.msra.gmra.mrb[48].mxu1 %vm1036_vm6, %v1502_v18 }
 0x584   :  { %1613 = vmatprep.mubr.f32.mxu1 %v3664_v8 }
 0x587   :  { %2410 = vmatmul.mubr.msk.f32.gmra.mrb[50].mxu1 %vm1036_vm6, %v1503_v37 }
 0x588   :  { %1619 = vmatprep.mubr.f32.mxu1 %v3664_v8 }
 0x58b   :  { %2411 = vmatmul.mubr.msk.f32.gmra.mrb[52].mxu1 %vm1036_vm6, %v1504_v38 }
 0x58c   :  { %1625 = vmatprep.mubr.f32.mxu1 %v3664_v8 }
 0x58f   :  { %2412 = vmatmul.mubr.msk.f32.gmra.mrb[54].mxu1 %vm1036_vm6, %v1505_v11 }
 0x590   :  { %1854 = vmatprep.mubr.f32.mxu1 %v3664_v8 }
 0x656   :  { %v1609_v49 = vpop.f32.mrb[48].mxu1 }
 0x657   :  { %v3386_v10 = vadd.f32 %v1609_v49, %v1514_v12  ;;  %v1611_v62 = vpop.f32.mrb[49].mxu1 }
 0x658   :  { %v3388_v43 = vadd.f32 %v1611_v62, %v1514_v12 }
 0x659   :  { %v1664_v59 = vmul.f32 %v3386_v10, %v3386_v10 }
 0x65a   :  { %v1615_v1 = vpop.f32.mrb[50].mxu1  ;;  %v1648_v50 = vadd.f32 %v3388_v43, %v3386_v10  ;;  %v1665_v55 = vmul.f32 %v3388_v43, %v3388_v43 }
 0x65b   :  { %v3396_v13 = vadd.f32 %v1615_v1, %v1519_v32  ;;  %v1617_v14 = vpop.f32.mrb[51].mxu1 }
 0x65c   :  { %v3398_v23 = vadd.f32 %v1617_v14, %v1519_v32  ;;  %1649 = vadd.xlane.f32.xlu1 %v1648_v50  ;;  %v1672_v63 = vadd.f32 %v1665_v55, %v1664_v59 }
 0x65d   :  { %v1666_v28 = vmul.f32 %v3396_v13, %v3396_v13 }
 0x65e   :  { %v1621_v31 = vpop.f32.mrb[52].mxu1  ;;  %1673 = vadd.xlane.f32.xlu0 %v1672_v63  ;;  %v1667_v35 = vmul.f32 %v3398_v23, %v3398_v23  ;;  %v1651_v20 = vadd.f32 %v3398_v23, %v3396_v13 }
 0x65f   :  { %v1623_v0 = vpop.f32.mrb[53].mxu1  ;;  %v3404_v19 = vadd.f32 %v1621_v31, %v1524_v2 }
 0x660   :  { %v3406_v6 = vadd.f32 %v1623_v0, %v1524_v2  ;;  %v1675_v21 = vadd.f32 %v1667_v35, %v1666_v28  ;;  %v3665_v0 = vld [vmem:[#allocation47_spill] sm:$0xff] }
 0x661   :  { %v1668_v40 = vmul.f32 %v3404_v19, %v3404_v19 }
 0x662   :  { %v1627_v5 = vpop.f32.mrb[54].mxu1  ;;  %1652 = vadd.xlane.f32.xlu0 %v1651_v20  ;;  %1676 = vadd.xlane.f32.xlu1 %v1675_v21  ;;  %v1654_v25 = vadd.f32 %v3406_v6, %v3404_v19  ;;  %v1669_v26 = vmul.f32 %v3406_v6, %v3406_v6  ;;  %v3666_v21 = vld [vmem:[#allocation46_spill] sm:$0xff] }
 0x663   :  { %v3410_v22 = vadd.f32 %v1627_v5, %v1529_v56  ;;  %v1629_v41 = vpop.f32.mrb[55].mxu1 }
 0x664   :  { %v3412_v47 = vadd.f32 %v1629_v41, %v1529_v56  ;;  %v1678_v48 = vadd.f32 %v1669_v26, %v1668_v40  ;;  %v3668_v40 = vld [vmem:[#allocation22_spill] sm:$0xff] }
 0x665   :  { %v1670_v27 = vmul.f32 %v3410_v22, %v3410_v22 }
 0x666   :  { %1655 = vadd.xlane.f32.xlu0 %v1654_v25  ;;  %v1657_v46 = vadd.f32 %v3412_v47, %v3410_v22  ;;  %v1671_v16 = vmul.f32 %v3412_v47, %v3412_v47  ;;  %v3667_v25 = vld [vmem:[#allocation23_spill] sm:$0xff] }
 0x668   :  { %1658 = vadd.xlane.f32.xlu1 %v1657_v46  ;;  %v1681_v60 = vadd.f32 %v1671_v16, %v1670_v27  ;;  %v3669_v16 = vld [vmem:[#allocation49_spill] sm:$0xff] }
 0x66a   :  { %1679 = vadd.xlane.f32.xlu0 %v1678_v48 }
 0x66c   :  { %1682 = vadd.xlane.f32.xlu1 %v1681_v60  ;;  %v3670_v60 = vld [vmem:[#allocation48_spill] sm:$0xff] }
 0x67d   :  { %1765 = vperm.xlu1 %2486, %v1755_v51  }
 0x680   :  { %1760 = vperm.xlu0 %2485, %v1754_v3  }
 0x681   :  { %1770 = vperm.xlu1 %2486, %v1756_v45  }
 0x684   :  { %1775 = vperm.xlu0 %2485, %v1757_v7   ;;  %v3671_v7 = vld [vmem:[#allocation25_spill] sm:$0xff] }
 0x6e9   :  { %v1650_v29 = vpop.xlane.xlu1 %1649 }
 0x6ea   :  { %v1660_v15 = vmul.f32 0.00390625, %v1650_v29 }
 0x6eb   :  { %v1674_v30 = vpop.xlane.xlu0 %1673 }
 0x6ec   :  { %v1684_v4 = vmul.f32 0.00390625, %v1674_v30  ;;  %v1688_v57 = vmul.f32 %v1660_v15, %v1660_v15  ;;  %v1708_v50 = vsub.f32 %v3386_v10, %v1660_v15  ;;  %v1709_v55 = vsub.f32 %v3388_v43, %v1660_v15 }
 0x6ee   :  { %v1692_v54 = vsub.f32 %v1684_v4, %v1688_v57 }
 0x6ef   :  { %v1653_v17 = vpop.xlane.xlu0 %1652  ;;  %v1677_v24 = vpop.xlane.xlu1 %1676 }
 0x6f0   :  { %v1696_v44 = vmax.f32 %v1692_v54, 0.0  ;;  %v1661_v39 = vmul.f32 0.00390625, %v1653_v17  ;;  %v1685_v53 = vmul.f32 0.00390625, %v1677_v24 }
 0x6f2   :  { %v1700_v61 = vadd.f32 1e-05, %v1696_v44  ;;  %v1689_v52 = vmul.f32 %v1661_v39, %v1661_v39  ;;  %v1710_v5 = vsub.f32 %v3396_v13, %v1661_v39  ;;  %v1711_v41 = vsub.f32 %v3398_v23, %v1661_v39  ;;  %v3672_v13 = vld [vmem:[#allocation24_spill] sm:$0xff] }
 0x6f3   :  { %v1656_v36 = vpop.xlane.xlu0 %1655 }
 0x6f4   :  { %2512 = vrsqrt.f32 %v1700_v61  ;;  %v1693_v33 = vsub.f32 %v1685_v53, %v1689_v52  ;;  %v1662_v42 = vmul.f32 0.00390625, %v1656_v36 }
 0x6f5   :  { %v1659_v34 = vpop.xlane.xlu1 %1658 }
 0x6f6   :  { %v1697_v58 = vmax.f32 %v1693_v33, 0.0  ;;  %v1663_v9 = vmul.f32 0.00390625, %v1659_v34  ;;  %v1690_v38 = vmul.f32 %v1662_v42, %v1662_v42  ;;  %v1712_v3 = vsub.f32 %v3404_v19, %v1662_v42 }
 0x6f7   :  { %v1680_v18 = vpop.xlane.xlu0 %1679  ;;  %v1713_v45 = vsub.f32 %v3406_v6, %v1662_v42  ;;  %v3673_v6 = vld [vmem:[#allocation51_spill] sm:$0xff]  ;;  %v3674_v42 = vld [vmem:[#allocation50_spill] sm:$0xff] }
 0x6f8   :  { %v1701_v37 = vadd.f32 1e-05, %v1697_v58  ;;  %v1686_v11 = vmul.f32 0.00390625, %v1680_v18  ;;  %v1691_v62 = vmul.f32 %v1663_v9, %v1663_v9  ;;  %v1715_v30 = vsub.f32 %v3412_v47, %v1663_v9  ;;  %v3675_v58 = vld [vmem:[#allocation53_spill] sm:$0xff]  ;;  %v3676_v18 = vld [vmem:[#allocation27_spill] sm:$0xff] }
 0x6f9   :  { %v1683_v12 = vpop.xlane.xlu1 %1682  ;;  %v1714_v61 = vsub.f32 %v3410_v22, %v1663_v9  ;;  %v3680_v9 = vld [vmem:[#allocation28_spill] sm:$0xff] }
 0x6fa   :  { %2514 = vrsqrt.f32 %v1701_v37  ;;  %v1694_v49 = vsub.f32 %v1686_v11, %v1690_v38  ;;  %v1687_v32 = vmul.f32 0.00390625, %v1683_v12  ;;  %v3677_v38 = vld [vmem:[#allocation52_spill] sm:$0xff]  ;;  %v3678_v12 = vld [vmem:[#allocation26_spill] sm:$0xff] }
 0x6fc   :  { %v1698_v59 = vmax.f32 %v1694_v49, 0.0  ;;  %v1695_v1 = vsub.f32 %v1687_v32, %v1691_v62  ;;  %v3679_v62 = vld [vmem:[#allocation29_spill] sm:$0xff] }
 0x6fe   :  { %v2513_v14 = vpop.eup %2512  ;;  %v1702_v63 = vadd.f32 1e-05, %v1698_v59  ;;  %v1699_v28 = vmax.f32 %v1695_v1, 0.0 }
 0x6ff   :  { %v1717_v31 = vmul.f32 %v2513_v14, %v1709_v55  ;;  %v1716_v35 = vmul.f32 %v2513_v14, %v1708_v50 }
 0x700   :  { %2516 = vrsqrt.f32 %v1702_v63  ;;  %v1703_v2 = vadd.f32 1e-05, %v1699_v28  ;;  %v1749_v28 = vld [vmem:[#allocation12 + $0x60] sm:$0xff] }
 0x701   :  { %v1725_v20 = vmul.f32 %v1717_v31, %v3665_v0  ;;  %v1724_v56 = vmul.f32 %v1716_v35, %v3666_v21  ;;  %v1750_v31 = vld [vmem:[#allocation12 + $0x68] sm:$0xff]  ;;  %v1751_v35 = vld [vmem:[#allocation12 + $0x70] sm:$0xff]  ;;  %v1761_v0 = vpop.permute.xlu0 %1760 }
 0x702   :  { %2518 = vrsqrt.f32 %v1703_v2  ;;  %v1752_v2 = vld [vmem:[#allocation12 + $0x78] sm:$0xff] }
 0x703   :  { %v1733_v10 = vadd.f32 %v1725_v20, %v3667_v25  ;;  %v1732_v43 = vadd.f32 %v1724_v56, %v3668_v40 }
 0x704   :  { %v2515_v26 = vpop.eup %2514 }
 0x705   :  { %v1719_v46 = vmul.f32 %v2515_v26, %v1711_v41  ;;  %v1718_v27 = vmul.f32 %v2515_v26, %v1710_v5  ;;  %v1741_v4 = vmax.f32 %v1733_v10, 0.0  ;;  %v1740_v57 = vmax.f32 %v1732_v43, 0.0  ;;  %v1766_v41 = vpop.permute.xlu1 %1765 }
 0x707   :  { %v1727_v48 = vmul.f32 %v1719_v46, %v3669_v16  ;;  %v1726_v51 = vmul.f32 %v1718_v27, %v3670_v60 }
 0x709   :  { %v1735_v29 = vadd.f32 %v1727_v48, %v3671_v7  ;;  %v1734_v15 = vadd.f32 %v1726_v51, %v3672_v13 }
 0x70a   :  { %v2517_v23 = vpop.eup %2516 }
 0x70b   :  { %v1743_v54 = vmax.f32 %v1735_v29, 0.0  ;;  %v1742_v17 = vmax.f32 %v1734_v15, 0.0  ;;  %v1721_v24 = vmul.f32 %v2517_v23, %v1713_v45  ;;  %v1720_v44 = vmul.f32 %v2517_v23, %v1712_v3  ;;  %v1771_v3 = vpop.permute.xlu1 %1770  ;;  %v1776_v23 = vpop.permute.xlu0 %1775 }
 0x70c   :  { %v2519_v39 = vpop.eup %2518 }
 0x70d   :  { %v2451_v52 = vpack.c.bf16 %v1743_v54, %v1741_v4  ;;  %v2453_v19 = vpack.c.bf16 %v1742_v17, %v1740_v57  ;;  %v1723_v53 = vmul.f32 %v2519_v39, %v1715_v30  ;;  %v1729_v36 = vmul.f32 %v1721_v24, %v3673_v6  ;;  %v2002_v6 = vld [vmem:[#allocation13 + $0x88] sm:$0xff] }
 0x70e   :  { %v1722_v33 = vmul.f32 %v2519_v39, %v1714_v61  ;;  %v1728_v34 = vmul.f32 %v1720_v44, %v3674_v42  ;;  %v2004_v42 = vld [vmem:[#allocation13 + $0x98] sm:$0xff] }
 0x70f   :  { %2452 = vmatprep.subr.bf16.mxu1 %v2451_v52  ;;  %v1731_v47 = vmul.f32 %v1723_v53, %v3675_v58  ;;  %v1737_v37 = vadd.f32 %v1729_v36, %v3676_v18  ;;  %v2001_v36 = vld [vmem:[#allocation13 + $0x80] sm:$0xff] }
 0x710   :  { %2454 = vmatpush1.bf16.msra.mxu1 %v2453_v19  ;;  %v1730_v11 = vmul.f32 %v1722_v33, %v3677_v38  ;;  %v1736_v49 = vadd.f32 %v1728_v34, %v3678_v12  ;;  %v2003_v33 = vld [vmem:[#allocation13 + $0x90] sm:$0xff] }
 0x711   :  { %v1739_v22 = vadd.f32 %v1731_v47, %v3679_v62  ;;  %v1745_v59 = vmax.f32 %v1737_v37, 0.0 }
 0x712   :  { %v1738_v32 = vadd.f32 %v1730_v11, %v3680_v9  ;;  %v1744_v50 = vmax.f32 %v1736_v49, 0.0 }
 0x713   :  { %v1747_v1 = vmax.f32 %v1739_v22, 0.0 }
 0x714   :  { %v1746_v55 = vmax.f32 %v1738_v32, 0.0 }
 0x715   :  { %v2455_v14 = vpack.c.bf16 %v1747_v1, %v1745_v59 }
 0x716   :  { %v2457_v63 = vpack.c.bf16 %v1746_v55, %v1744_v50 }
 0x717   :  { %2456 = vmatprep.subr.bf16.mxu1 %v2455_v14 }
 0x718   :  { %2458 = vmatpush1.bf16.msra.mxu1 %v2457_v63 }
 0x71b   :  { %2413 = vmatmul.mubr.msk.f32.vlgmr.msra.gmra.mrb[56].mxu1 %vm1036_vm6, %v1749_v28 }
 0x71c   :  { %1860 = vmatprep.mubr.f32.mxu1 %v3664_v8 }
 0x71f   :  { %2414 = vmatmul.mubr.msk.f32.gmra.mrb[58].mxu1 %vm1036_vm6, %v1750_v31 }
 0x720   :  { %1866 = vmatprep.mubr.f32.mxu1 %v3664_v8 }
 0x723   :  { %2415 = vmatmul.mubr.msk.f32.gmra.mrb[60].mxu1 %vm1036_vm6, %v1751_v35 }
 0x724   :  { %1872 = vmatprep.mubr.f32.mxu1 %v3664_v8 }
 0x727   :  { %2416 = vmatmul.mubr.msk.f32.gmra.mrb[62].mxu1 %vm1036_vm6, %v1752_v2 }
 0x728   :  { %2101 = vmatprep.mubr.f32.mxu1 %v3664_v8 }
 0x7ee   :  { %v1856_v20 = vpop.f32.mrb[56].mxu1 }
 0x7ef   :  { %v3458_v21 = vadd.f32 %v1856_v20, %v1761_v0  ;;  %v1858_v56 = vpop.f32.mrb[57].mxu1 }
 0x7f0   :  { %v3460_v5 = vadd.f32 %v1858_v56, %v1761_v0 }
 0x7f1   :  { %v1911_v25 = vmul.f32 %v3458_v21, %v3458_v21 }
 0x7f2   :  { %v1862_v10 = vpop.f32.mrb[58].mxu1  ;;  %v1895_v40 = vadd.f32 %v3460_v5, %v3458_v21  ;;  %v1912_v43 = vmul.f32 %v3460_v5, %v3460_v5 }
 0x7f3   :  { %v3468_v26 = vadd.f32 %v1862_v10, %v1766_v41  ;;  %v1864_v46 = vpop.f32.mrb[59].mxu1 }
 0x7f4   :  { %v3470_v27 = vadd.f32 %v1864_v46, %v1766_v41  ;;  %1896 = vadd.xlane.f32.xlu1 %v1895_v40  ;;  %v1919_v16 = vadd.f32 %v1912_v43, %v1911_v25 }
 0x7f5   :  { %v1913_v48 = vmul.f32 %v3468_v26, %v3468_v26 }
 0x7f6   :  { %v1868_v60 = vpop.f32.mrb[60].mxu1  ;;  %1920 = vadd.xlane.f32.xlu0 %v1919_v16  ;;  %v1914_v51 = vmul.f32 %v3470_v27, %v3470_v27  ;;  %v1898_v15 = vadd.f32 %v3470_v27, %v3468_v26 }
 0x7f7   :  { %v1870_v45 = vpop.f32.mrb[61].mxu1  ;;  %v3476_v7 = vadd.f32 %v1868_v60, %v1771_v3 }
 0x7f8   :  { %v3478_v29 = vadd.f32 %v1870_v45, %v1771_v3  ;;  %v1922_v13 = vadd.f32 %v1914_v51, %v1913_v48  ;;  %v3681_v45 = vld [vmem:[#allocation55_spill] sm:$0xff] }
 0x7f9   :  { %v1915_v24 = vmul.f32 %v3476_v7, %v3476_v7 }
 0x7fa   :  { %v1874_v30 = vpop.f32.mrb[62].mxu1  ;;  %1923 = vadd.xlane.f32.xlu1 %v1922_v13  ;;  %1899 = vadd.xlane.f32.xlu0 %v1898_v15  ;;  %v1901_v17 = vadd.f32 %v3478_v29, %v3476_v7  ;;  %v1916_v44 = vmul.f32 %v3478_v29, %v3478_v29  ;;  %v3682_v15 = vld [vmem:[#allocation54_spill] sm:$0xff] }
 0x7fb   :  { %v3482_v4 = vadd.f32 %v1874_v30, %v1776_v23  ;;  %v1876_v57 = vpop.f32.mrb[63].mxu1 }
 0x7fc   :  { %v3484_v54 = vadd.f32 %v1876_v57, %v1776_v23  ;;  %v1925_v19 = vadd.f32 %v1916_v44, %v1915_v24  ;;  %v3684_v24 = vld [vmem:[#allocation30_spill] sm:$0xff] }
 0x7fd   :  { %v1917_v61 = vmul.f32 %v3482_v4, %v3482_v4 }
 0x7fe   :  { %1902 = vadd.xlane.f32.xlu0 %v1901_v17  ;;  %v1904_v39 = vadd.f32 %v3484_v54, %v3482_v4  ;;  %v1918_v52 = vmul.f32 %v3484_v54, %v3484_v54  ;;  %v3683_v17 = vld [vmem:[#allocation31_spill] sm:$0xff] }
 0x800   :  { %1905 = vadd.xlane.f32.xlu1 %v1904_v39  ;;  %v1928_v53 = vadd.f32 %v1918_v52, %v1917_v61  ;;  %v3685_v52 = vld [vmem:[#allocation57_spill] sm:$0xff] }
 0x802   :  { %1926 = vadd.xlane.f32.xlu0 %v1925_v19 }
 0x804   :  { %1929 = vadd.xlane.f32.xlu1 %v1928_v53  ;;  %v3686_v53 = vld [vmem:[#allocation56_spill] sm:$0xff] }
 0x815   :  { %2012 = vperm.xlu1 %2486, %v2002_v6  }
 0x818   :  { %2007 = vperm.xlu0 %2485, %v2001_v36  }
 0x819   :  { %2017 = vperm.xlu1 %2486, %v2003_v33  }
 0x81c   :  { %2022 = vperm.xlu0 %2485, %v2004_v42   ;;  %v3687_v42 = vld [vmem:[#allocation33_spill] sm:$0xff] }
 0x881   :  { %v1897_v34 = vpop.xlane.xlu1 %1896 }
 0x882   :  { %v1907_v58 = vmul.f32 0.00390625, %v1897_v34 }
 0x883   :  { %v1921_v47 = vpop.xlane.xlu0 %1920 }
 0x884   :  { %v1931_v18 = vmul.f32 0.00390625, %v1921_v47  ;;  %v1935_v37 = vmul.f32 %v1907_v58, %v1907_v58  ;;  %v1955_v40 = vsub.f32 %v3458_v21, %v1907_v58  ;;  %v1956_v43 = vsub.f32 %v3460_v5, %v1907_v58 }
 0x886   :  { %v1939_v38 = vsub.f32 %v1931_v18, %v1935_v37 }
 0x887   :  { %v1900_v11 = vpop.xlane.xlu0 %1899  ;;  %v1924_v12 = vpop.xlane.xlu1 %1923 }
 0x888   :  { %v1943_v49 = vmax.f32 %v1939_v38, 0.0  ;;  %v1908_v62 = vmul.f32 0.00390625, %v1900_v11  ;;  %v1932_v32 = vmul.f32 0.00390625, %v1924_v12 }
 0x88a   :  { %v1947_v22 = vadd.f32 1e-05, %v1943_v49  ;;  %v1936_v9 = vmul.f32 %v1908_v62, %v1908_v62  ;;  %v1957_v30 = vsub.f32 %v3468_v26, %v1908_v62  ;;  %v1958_v57 = vsub.f32 %v3470_v27, %v1908_v62  ;;  %v3688_v26 = vld [vmem:[#allocation32_spill] sm:$0xff] }
 0x88b   :  { %v1903_v59 = vpop.xlane.xlu0 %1902 }
 0x88c   :  { %2520 = vrsqrt.f32 %v1947_v22  ;;  %v1940_v1 = vsub.f32 %v1932_v32, %v1936_v9  ;;  %v1909_v50 = vmul.f32 0.00390625, %v1903_v59 }
 0x88d   :  { %v1906_v55 = vpop.xlane.xlu1 %1905 }
 0x88e   :  { %v1944_v14 = vmax.f32 %v1940_v1, 0.0  ;;  %v1910_v63 = vmul.f32 0.00390625, %v1906_v55  ;;  %v1937_v35 = vmul.f32 %v1909_v50, %v1909_v50  ;;  %v1959_v36 = vsub.f32 %v3476_v7, %v1909_v50 }
 0x88f   :  { %v1927_v28 = vpop.xlane.xlu0 %1926  ;;  %v1960_v33 = vsub.f32 %v3478_v29, %v1909_v50  ;;  %v3689_v29 = vld [vmem:[#allocation59_spill] sm:$0xff]  ;;  %v3690_v50 = vld [vmem:[#allocation58_spill] sm:$0xff] }
 0x890   :  { %v1948_v31 = vadd.f32 1e-05, %v1944_v14  ;;  %v1933_v2 = vmul.f32 0.00390625, %v1927_v28  ;;  %v1938_v56 = vmul.f32 %v1910_v63, %v1910_v63  ;;  %v1962_v47 = vsub.f32 %v3484_v54, %v1910_v63  ;;  %v3691_v14 = vld [vmem:[#allocation61_spill] sm:$0xff]  ;;  %v3692_v28 = vld [vmem:[#allocation35_spill] sm:$0xff] }
 0x891   :  { %v1930_v0 = vpop.xlane.xlu1 %1929  ;;  %v1961_v22 = vsub.f32 %v3482_v4, %v1910_v63  ;;  %v3696_v63 = vld [vmem:[#allocation36_spill] sm:$0xff] }
 0x892   :  { %2522 = vrsqrt.f32 %v1948_v31  ;;  %v1941_v20 = vsub.f32 %v1933_v2, %v1937_v35  ;;  %v1934_v41 = vmul.f32 0.00390625, %v1930_v0  ;;  %v3693_v35 = vld [vmem:[#allocation60_spill] sm:$0xff]  ;;  %v3694_v0 = vld [vmem:[#allocation34_spill] sm:$0xff] }
 0x894   :  { %v1945_v25 = vmax.f32 %v1941_v20, 0.0  ;;  %v1942_v10 = vsub.f32 %v1934_v41, %v1938_v56  ;;  %v3695_v56 = vld [vmem:[#allocation37_spill] sm:$0xff] }
 0x896   :  { %v2521_v46 = vpop.eup %2520  ;;  %v1949_v16 = vadd.f32 1e-05, %v1945_v25  ;;  %v1946_v48 = vmax.f32 %v1942_v10, 0.0 }
 0x897   :  { %v1964_v60 = vmul.f32 %v2521_v46, %v1956_v43  ;;  %v1963_v51 = vmul.f32 %v2521_v46, %v1955_v40 }
 0x898   :  { %2524 = vrsqrt.f32 %v1949_v16  ;;  %v1950_v3 = vadd.f32 1e-05, %v1946_v48  ;;  %v1996_v48 = vld [vmem:[#allocation12 + $0x80] sm:$0xff] }
 0x899   :  { %v1972_v13 = vmul.f32 %v1964_v60, %v3681_v45  ;;  %v1971_v23 = vmul.f32 %v1963_v51, %v3682_v15  ;;  %v1997_v60 = vld [vmem:[#allocation12 + $0x88] sm:$0xff]  ;;  %v1998_v51 = vld [vmem:[#allocation12 + $0x90] sm:$0xff]  ;;  %v2008_v45 = vpop.permute.xlu0 %2007 }
 0x89a   :  { %2526 = vrsqrt.f32 %v1950_v3  ;;  %v1999_v3 = vld [vmem:[#allocation12 + $0x98] sm:$0xff] }
 0x89b   :  { %v1980_v21 = vadd.f32 %v1972_v13, %v3683_v17  ;;  %v1979_v5 = vadd.f32 %v1971_v23, %v3684_v24 }
 0x89c   :  { %v2523_v44 = vpop.eup %2522 }
 0x89d   :  { %v1966_v39 = vmul.f32 %v2523_v44, %v1958_v57  ;;  %v1965_v61 = vmul.f32 %v2523_v44, %v1957_v30  ;;  %v1988_v18 = vmax.f32 %v1980_v21, 0.0  ;;  %v1987_v37 = vmax.f32 %v1979_v5, 0.0  ;;  %v2013_v57 = vpop.permute.xlu1 %2012 }
 0x89f   :  { %v1974_v19 = vmul.f32 %v1966_v39, %v3685_v52  ;;  %v1973_v6 = vmul.f32 %v1965_v61, %v3686_v53 }
 0x8a1   :  { %v1982_v34 = vadd.f32 %v1974_v19, %v3687_v42  ;;  %v1981_v58 = vadd.f32 %v1973_v6, %v3688_v26 }
 0x8a2   :  { %v2525_v27 = vpop.eup %2524 }
 0x8a3   :  { %v1990_v38 = vmax.f32 %v1982_v34, 0.0  ;;  %v1989_v11 = vmax.f32 %v1981_v58, 0.0  ;;  %v1968_v12 = vmul.f32 %v2525_v27, %v1960_v33  ;;  %v1967_v49 = vmul.f32 %v2525_v27, %v1959_v36  ;;  %v2018_v33 = vpop.permute.xlu1 %2017 }
 0x8a4   :  { %v2527_v62 = vpop.eup %2526 }
 0x8a5   :  { %v2459_v9 = vpack.c.bf16 %v1990_v38, %v1988_v18  ;;  %v2461_v7 = vpack.c.bf16 %v1989_v11, %v1987_v37  ;;  %v1970_v32 = vmul.f32 %v2527_v62, %v1962_v47  ;;  %v1976_v59 = vmul.f32 %v1968_v12, %v3689_v29  ;;  %v2243_v11 = vld [vmem:[#allocation15 + $0x8] sm:$0xff]  ;;  %v2242_v12 = vld [vmem:[#allocation15] sm:$0xff] }
 0x8a6   :  { %v1969_v1 = vmul.f32 %v2527_v62, %v1961_v22  ;;  %v1975_v55 = vmul.f32 %v1967_v49, %v3690_v50  ;;  %v2245_v49 = vld [vmem:[#allocation15 + $0x18] sm:$0xff]  ;;  %v2023_v62 = vpop.permute.xlu0 %2022  ;;  %v2292_v50 = vld [vmem:[#allocation3] sm:$0x1] }
 0x8a7   :  { %2460 = vmatprep.subr.bf16.mxu1 %v2459_v9  ;;  %v1978_v54 = vmul.f32 %v1970_v32, %v3691_v14  ;;  %v1984_v31 = vadd.f32 %v1976_v59, %v3692_v28 }
 0x8a8   :  { %2462 = vmatpush1.bf16.msra.mxu1 %v2461_v7  ;;  %v1977_v2 = vmul.f32 %v1969_v1, %v3693_v35  ;;  %v1983_v20 = vadd.f32 %v1975_v55, %v3694_v0  ;;  %v2244_v1 = vld [vmem:[#allocation15 + $0x10] sm:$0xff] }
 0x8a9   :  { %v1986_v4 = vadd.f32 %v1978_v54, %v3695_v56  ;;  %v1992_v25 = vmax.f32 %v1984_v31, 0.0 }
 0x8aa   :  { %v1985_v41 = vadd.f32 %v1977_v2, %v3696_v63  ;;  %v1991_v40 = vmax.f32 %v1983_v20, 0.0 }
 0x8ab   :  { %v1994_v10 = vmax.f32 %v1986_v4, 0.0 }
 0x8ac   :  { %v1993_v43 = vmax.f32 %v1985_v41, 0.0 }
 0x8ad   :  { %v2463_v46 = vpack.c.bf16 %v1994_v10, %v1992_v25 }
 0x8ae   :  { %v2465_v16 = vpack.c.bf16 %v1993_v43, %v1991_v40 }
 0x8af   :  { %2464 = vmatprep.subr.bf16.mxu1 %v2463_v46 }
 0x8b0   :  { %2466 = vmatpush1.bf16.msra.mxu1 %v2465_v16 }
 0x8b3   :  { %2417 = vmatmul.mubr.msk.f32.vlgmr.msra.gmra.mrb[64].mxu1 %vm1036_vm6, %v1996_v48 }
 0x8b4   :  { %2107 = vmatprep.mubr.f32.mxu1 %v3664_v8 }
 0x8b7   :  { %2418 = vmatmul.mubr.msk.f32.gmra.mrb[66].mxu1 %vm1036_vm6, %v1997_v60 }
 0x8b8   :  { %2113 = vmatprep.mubr.f32.mxu1 %v3664_v8 }
 0x8bb   :  { %2419 = vmatmul.mubr.msk.f32.gmra.mrb[68].mxu1 %vm1036_vm6, %v1998_v51 }
 0x8bc   :  { %2119 = vmatprep.mubr.f32.mxu1 %v3664_v8 }
 0x8bf   :  { %2420 = vmatmul.mubr.msk.f32.gmra.mrb[70].mxu1 %vm1036_vm6, %v1999_v3 }
 0x986   :  { %v2103_v13 = vpop.f32.mrb[64].mxu1 }
 0x987   :  { %v3529_v15 = vadd.f32 %v2103_v13, %v2008_v45  ;;  %v2105_v23 = vpop.f32.mrb[65].mxu1 }
 0x988   :  { %v3531_v30 = vadd.f32 %v2105_v23, %v2008_v45 }
 0x989   :  { %v2158_v24 = vmul.f32 %v3529_v15, %v3529_v15 }
 0x98a   :  { %v2109_v17 = vpop.f32.mrb[66].mxu1  ;;  %v2142_v21 = vadd.f32 %v3531_v30, %v3529_v15  ;;  %v2159_v8 = vmul.f32 %v3531_v30, %v3531_v30 }
 0x98b   :  { %v3539_v5 = vadd.f32 %v2109_v17, %v2013_v57  ;;  %v2111_v44 = vpop.f32.mrb[67].mxu1 }
 0x98c   :  { %v3541_v39 = vadd.f32 %v2111_v44, %v2013_v57  ;;  %2143 = vadd.xlane.f32.xlu1 %v2142_v21  ;;  %v2166_v52 = vadd.f32 %v2159_v8, %v2158_v24  ;;  %v3697_v44 = vld [vmem:[#allocation62_spill] sm:$0xff] }
 0x98d   :  { %v2160_v53 = vmul.f32 %v3539_v5, %v3539_v5 }
 0x98e   :  { %v2115_v61 = vpop.f32.mrb[68].mxu1  ;;  %v2145_v19 = vadd.f32 %v3541_v39, %v3539_v5  ;;  %v2161_v6 = vmul.f32 %v3541_v39, %v3541_v39 }
 0x98f   :  { %v2117_v36 = vpop.f32.mrb[69].mxu1  ;;  %v3549_v42 = vadd.f32 %v2115_v61, %v2018_v33 }
 0x990   :  { %2167 = vadd.xlane.f32.xlu1 %v2166_v52  ;;  %2146 = vadd.xlane.f32.xlu0 %v2145_v19  ;;  %v3551_v34 = vadd.f32 %v2117_v36, %v2018_v33  ;;  %v2169_v58 = vadd.f32 %v2161_v6, %v2160_v53  ;;  %v3698_v52 = vld [vmem:[#allocation63_spill] sm:$0xff]  ;;  %v3699_v33 = vld [vmem:[#allocation38_spill] sm:$0xff] }
 0x991   :  { %v2162_v18 = vmul.f32 %v3549_v42, %v3549_v42 }
 0x992   :  { %v2121_v26 = vpop.f32.mrb[70].mxu1  ;;  %v2148_v47 = vadd.f32 %v3551_v34, %v3549_v42  ;;  %v2163_v37 = vmul.f32 %v3551_v34, %v3551_v34 }
 0x993   :  { %v2123_v27 = vpop.f32.mrb[71].mxu1  ;;  %v3559_v22 = vadd.f32 %v2121_v26, %v2023_v62  ;;  %v3700_v26 = vld [vmem:[#allocation39_spill] sm:$0xff] }
 0x994   :  { %2170 = vadd.xlane.f32.xlu0 %v2169_v58  ;;  %v2172_v38 = vadd.f32 %v2163_v37, %v2162_v18  ;;  %v3561_v9 = vadd.f32 %v2123_v27, %v2023_v62  ;;  %v3701_v58 = vld [vmem:[#allocation64_spill] sm:$0xff] }
 0x995   :  { %v2164_v32 = vmul.f32 %v3559_v22, %v3559_v22 }
 0x996   :  { %v2151_v7 = vadd.f32 %v3561_v9, %v3559_v22  ;;  %v2165_v29 = vmul.f32 %v3561_v9, %v3561_v9 }
 0x998   :  { %2149 = vadd.xlane.f32.xlu0 %v2148_v47  ;;  %v2175_v59 = vadd.f32 %v2165_v29, %v2164_v32  ;;  %v3702_v47 = vld [vmem:[#allocation65_spill] sm:$0xff] }
 0x99c   :  { %2173 = vadd.xlane.f32.xlu0 %v2172_v38 }
 0x9a1   :  { %2253 = vperm.xlu1 %2486, %v2243_v11  }
 0x9b2   :  { %2248 = vperm.xlu0 %2485, %v2242_v12  }
 0x9b6   :  { %2263 = vperm.xlu0 %2485, %v2245_v49  }
 0x9c5   :  { %2152 = vadd.xlane.f32.xlu1 %v2151_v7 }
 0x9c9   :  { %2176 = vadd.xlane.f32.xlu1 %v2175_v59 }
 0x9da   :  { %2258 = vperm.xlu1 %2486, %v2244_v1  }
 0x9de   :  { %2295 = vperm.xlu1 %2486, %v2292_v50  }
 0xa19   :  { %v2144_v55 = vpop.xlane.xlu1 %2143 }
 0xa1a   :  { %v2154_v14 = vmul.f32 0.00390625, %v2144_v55 }
 0xa1c   :  { %v2182_v35 = vmul.f32 %v2154_v14, %v2154_v14  ;;  %v2202_v45 = vsub.f32 %v3529_v15, %v2154_v14  ;;  %v2203_v13 = vsub.f32 %v3531_v30, %v2154_v14 }
 0xa1d   :  { %v2147_v54 = vpop.xlane.xlu0 %2146  ;;  %v2168_v28 = vpop.xlane.xlu1 %2167 }
 0xa1e   :  { %v2155_v31 = vmul.f32 0.00390625, %v2147_v54  ;;  %v2178_v2 = vmul.f32 0.00390625, %v2168_v28 }
 0xa20   :  { %v2186_v0 = vsub.f32 %v2178_v2, %v2182_v35  ;;  %v2183_v4 = vmul.f32 %v2155_v31, %v2155_v31  ;;  %v2204_v24 = vsub.f32 %v3539_v5, %v2155_v31  ;;  %v2205_v8 = vsub.f32 %v3541_v39, %v2155_v31  ;;  %v3703_v5 = vld [vmem:[#allocation40_spill] sm:$0xff]  ;;  %v3704_v39 = vld [vmem:[#allocation41_spill] sm:$0xff] }
 0xa21   :  { %v2171_v20 = vpop.xlane.xlu0 %2170  ;;  %v2254_v1 = vpop.permute.xlu1 %2253 }
 0xa22   :  { %v2190_v56 = vmax.f32 %v2186_v0, 0.0  ;;  %v2179_v63 = vmul.f32 0.00390625, %v2171_v20  ;;  %v3705_v0 = vld [vmem:[#allocation66_spill] sm:$0xff] }
 0xa24   :  { %v2194_v41 = vadd.f32 1e-05, %v2190_v56  ;;  %v2187_v25 = vsub.f32 %v2179_v63, %v2183_v4  ;;  %v3706_v56 = vld [vmem:[#allocation67_spill] sm:$0xff]  ;;  %v3707_v63 = vld [vmem:[#allocation42_spill] sm:$0xff] }
 0xa25   :  { %v2150_v10 = vpop.xlane.xlu0 %2149 }
 0xa26   :  { %2528 = vrsqrt.f32 %v2194_v41  ;;  %v2191_v40 = vmax.f32 %v2187_v25, 0.0  ;;  %v2156_v43 = vmul.f32 0.00390625, %v2150_v10 }
 0xa28   :  { %v2195_v46 = vadd.f32 1e-05, %v2191_v40  ;;  %v2184_v48 = vmul.f32 %v2156_v43, %v2156_v43  ;;  %v2206_v7 = vsub.f32 %v3549_v42, %v2156_v43  ;;  %v2207_v32 = vsub.f32 %v3551_v34, %v2156_v43  ;;  %v3708_v42 = vld [vmem:[#allocation43_spill] sm:$0xff] }
 0xa29   :  { %v2174_v16 = vpop.xlane.xlu0 %2173 }
 0xa2a   :  { %2530 = vrsqrt.f32 %v2195_v46  ;;  %v2180_v60 = vmul.f32 0.00390625, %v2174_v16 }
 0xa2c   :  { %v2188_v51 = vsub.f32 %v2180_v60, %v2184_v48 }
 0xa2e   :  { %v2192_v3 = vmax.f32 %v2188_v51, 0.0 }
 0xa30   :  { %v2529_v23 = vpop.eup %2528  ;;  %v2196_v57 = vadd.f32 1e-05, %v2192_v3 }
 0xa31   :  { %v2210_v17 = vmul.f32 %v2529_v23, %v2202_v45  ;;  %v2211_v21 = vmul.f32 %v2529_v23, %v2203_v13  ;;  %v2249_v29 = vpop.permute.xlu0 %2248 }
 0xa32   :  { %2532 = vrsqrt.f32 %v2196_v57 }
 0xa33   :  { %v2218_v61 = vmul.f32 %v2210_v17, %v3697_v44  ;;  %v2219_v19 = vmul.f32 %v2211_v21, %v3698_v52  ;;  %v3709_v52 = vld [vmem:[#allocation68_spill] sm:$0xff] }
 0xa34   :  { %v2531_v53 = vpop.eup %2530 }
 0xa35   :  { %v2212_v6 = vmul.f32 %v2531_v53, %v2204_v24  ;;  %v2213_v36 = vmul.f32 %v2531_v53, %v2205_v8  ;;  %v2226_v15 = vadd.f32 %v2218_v61, %v3699_v33  ;;  %v2227_v30 = vadd.f32 %v2219_v19, %v3700_v26  ;;  %v3710_v53 = vld [vmem:[#allocation69_spill] sm:$0xff] }
 0xa37   :  { %v2220_v27 = vmul.f32 %v2212_v6, %v3701_v58  ;;  %v2221_v18 = vmul.f32 %v2213_v36, %v3702_v47  ;;  %v2234_v37 = vmax.f32 %v2226_v15, 0.0  ;;  %v2235_v38 = vmax.f32 %v2227_v30, 0.0  ;;  %v3711_v36 = vld [vmem:[#allocation44_spill] sm:$0xff]  ;;  %v3712_v15 = vld [vmem:[#allocation45_spill] sm:$0xff] }
 0xa39   :  { %v2228_v11 = vadd.f32 %v2220_v27, %v3703_v5  ;;  %v2229_v12 = vadd.f32 %v2221_v18, %v3704_v39  ;;  %v2266_v50 = vmul.f32 %v2249_v29, %v2234_v37  ;;  %v2267_v55 = vmul.f32 %v2249_v29, %v2235_v38  ;;  %v2264_v27 = vpop.permute.xlu0 %2263 }
 0xa3a   :  { %v2298_v38 = vlaneseq }
 0xa3b   :  { %v2236_v49 = vmax.f32 %v2228_v11, 0.0  ;;  %v2237_v62 = vmax.f32 %v2229_v12, 0.0 }
 0xa3c   :  { %v2533_v59 = vpop.eup %2532  ;;  %v2299_v12 = vshrl.u32 %v2298_v38, 7  ;;  %vm2324_vm7 = vcmp.lt.s32.totalorder %v2298_v38, 256 }
 0xa3d   :  { %v2268_v14 = vmul.f32 %v2254_v1, %v2236_v49  ;;  %v2269_v54 = vmul.f32 %v2254_v1, %v2237_v62  ;;  %v2214_v28 = vmul.f32 %v2533_v59, %v2206_v7  ;;  %v2215_v31 = vmul.f32 %v2533_v59, %v2207_v32 }
 0xa3e   :  { %v2736_v7 = vmov 1966171168   ;;  %v2300_v1 = vsub.s32 0, %v2299_v12 }
 0xa3f   :  { %v2274_v35 = vadd.f32 %v2268_v14, %v2266_v50  ;;  %v2283_v2 = vadd.f32 %v2269_v54, %v2267_v55  ;;  %v2222_v20 = vmul.f32 %v2214_v28, %v3705_v0  ;;  %v2223_v4 = vmul.f32 %v2215_v31, %v3706_v56 }
 0xa40   :  { %v2308_v32 = vunpack.c.l.s4 %v2736_v7 }
 0xa41   :  { %v2230_v41 = vadd.f32 %v2222_v20, %v3707_v63  ;;  %v2231_v25 = vadd.f32 %v2223_v4, %v3708_v42 }
 0xa42   :  { %v2309_v54 = vunpack.c.0.s8 %v2308_v32 }
 0xa43   :  { %v2238_v48 = vmax.f32 %v2230_v41, 0.0  ;;  %v2239_v60 = vmax.f32 %v2231_v25, 0.0 }
 0xa52   :  { %v2153_v34 = vpop.xlane.xlu1 %2152 }
 0xa53   :  { %v2157_v10 = vmul.f32 0.00390625, %v2153_v34 }
 0xa55   :  { %v2185_v43 = vmul.f32 %v2157_v10, %v2157_v10  ;;  %v2208_v21 = vsub.f32 %v3559_v22, %v2157_v10  ;;  %v2209_v24 = vsub.f32 %v3561_v9, %v2157_v10 }
 0xa56   :  { %v2177_v40 = vpop.xlane.xlu1 %2176 }
 0xa57   :  { %v2181_v46 = vmul.f32 0.00390625, %v2177_v40 }
 0xa59   :  { %v2189_v16 = vsub.f32 %v2181_v46, %v2185_v43 }
 0xa5a   :  { %v2259_v51 = vpop.permute.xlu1 %2258 }
 0xa5b   :  { %v2193_v3 = vmax.f32 %v2189_v16, 0.0  ;;  %v2270_v45 = vmul.f32 %v2259_v51, %v2238_v48  ;;  %v2271_v13 = vmul.f32 %v2259_v51, %v2239_v60 }
 0xa5d   :  { %v2197_v23 = vadd.f32 1e-05, %v2193_v3  ;;  %v2275_v57 = vadd.f32 %v2274_v35, %v2270_v45  ;;  %v2284_v17 = vadd.f32 %v2283_v2, %v2271_v13  ;;  %v2312_v2 = vsub.s32 %v2309_v54, %v2299_v12 }
 0xa5e   :  { %v2296_v50 = vpop.permute.xlu1 %2295 }
 0xa5f   :  { %2534 = vrsqrt.f32 %v2197_v23  ;;  %v2301_v35 = vrot.slane %v2296_v50, %v2300_v1 }
 0xa69   :  { %v2535_v8 = vpop.eup %2534 }
 0xa6a   :  { %v2216_v44 = vmul.f32 %v2535_v8, %v2208_v21  ;;  %v2217_v61 = vmul.f32 %v2535_v8, %v2209_v24 }
 0xa6c   :  { %v2224_v19 = vmul.f32 %v2216_v44, %v3709_v52  ;;  %v2225_v6 = vmul.f32 %v2217_v61, %v3710_v53 }
 0xa6e   :  { %v2232_v33 = vadd.f32 %v2224_v19, %v3711_v36  ;;  %v2233_v26 = vadd.f32 %v2225_v6, %v3712_v15 }
 0xa70   :  { %v2240_v30 = vmax.f32 %v2232_v33, 0.0  ;;  %v2241_v58 = vmax.f32 %v2233_v26, 0.0 }
 0xa72   :  { %v2272_v47 = vmul.f32 %v2264_v27, %v2240_v30  ;;  %v2273_v18 = vmul.f32 %v2264_v27, %v2241_v58 }
 0xa74   :  { %v2276_v37 = vadd.f32 %v2275_v57, %v2272_v47  ;;  %v2285_v22 = vadd.f32 %v2284_v17, %v2273_v18 }
 0xa76   :  { %v2277_v9 = vrot.slane %v2276_v37, 4  ;;  %v2286_v5 = vrot.slane %v2285_v22, 4 }
 0xa78   :  { %v2278_v11 = vadd.f32 %v2277_v9, %v2276_v37  ;;  %v2287_v39 = vadd.f32 %v2286_v5, %v2285_v22 }
 0xa7a   :  { %v2279_v49 = vrot.slane %v2278_v11, 2  ;;  %v2288_v62 = vrot.slane %v2287_v39, 2 }
 0xa7c   :  { %v2280_v29 = vadd.f32 %v2279_v49, %v2278_v11  ;;  %v2289_v59 = vadd.f32 %v2288_v62, %v2287_v39 }
 0xa7e   :  { %v2281_v55 = vrot.slane %v2280_v29, 1  ;;  %v2290_v14 = vrot.slane %v2289_v59, 1 }
 0xa80   :  { %v2282_v28 = vadd.f32 %v2281_v55, %v2280_v29  ;;  %v2291_v31 = vadd.f32 %v2290_v14, %v2289_v59 }
 0xa82   :  { %v2302_v0 = vadd.f32 %v2301_v35, %v2282_v28  ;;  %v2303_v20 = vadd.f32 %v2301_v35, %v2291_v31 }
 0xa84   :  { %v2306_v56 = vcombine.low %v2302_v0, %v2303_v20 }
 0xa86   :  { %v2313_v4 = vrot.slane %v2306_v56, %v2312_v2 }
 0xa88   :  { %v2320_v63 = vrot.slane %v2313_v4, %v2312_v2 }
 0xa8a   :  { %2326 = vst.msk [vmem:[#allocation16] sm:$0x3] %vm2324_vm7, %v2320_v63 }
 0xa8b   :  { %2701 = shalt.err (!%p2698_p4)
}
 0xa8c   :  { %s2702_s3 = scalar_lea.hbm %s3613_s8, 32 }
 0xa8d   :  { %p2703_p5 = scmp.ne.s32.totalorder %s3613_s8, %s2702_s3  ;;  %p2706_p6 = scmp.lt.u32.totalorder %s2702_s3, %s3613_s8 }
 0xa8f   :  { %p2708_p7 = pnand %p2706_p6, %p2703_p5 }
 0xa91   :  { %2711 = shalt.err (!%p2708_p7)
}
 0xa92   :  { %2336 = dma.vmem_to_hbm [thread:$0]  %s2334_s30, 32, %s3613_s8, [#allocation6]  }
 0xa93   :  { %2720 = dma.done.wait [#allocation6], 32  }
 0xa94   :  { %2721 = vsyncadd [#allocation6], 4294967264 }
 0xa95   :  { %2340 = vsyncpa [#allocation5], 1 }
 0xa96   :  { %2341 = vsyncpa [#allocation8], 1 }
 0xa97   :  { %2342 = vsyncpa [#allocation11], 1 }
 0xa98   :  { %2343 = vsyncpa [#allocation14], 1 }
 0xa99   :  { %2344 = vsyncpa [#allocation6], 1 }

</bundles_post_ra>
